<compile_context>
chip_gen: v5e
topology: v5e:2x2
jax: 0.10.0
libtpu: 0.0.40
codegen_flags: <defaults>
</compile_context>

<pallas_src>
import functools

import jax
import jax.numpy as jnp
from jax.experimental import pallas as pl
from jax.experimental.pallas import tpu as pltpu

_BATCH_PAD = 16    # bf16 packed-tile row count: batch padded to this
_LANES = 128       # lane count: 4*H padded to a multiple of this


def _round_up(x, m):
    return ((x + m - 1) // m) * m


# ----------------------------- fused Pallas kernel ------------------------------


def _make_encoder_kernel(num_layers, T, Bp):
    """Builds the fused kernel for static layer count / seq length / padded batch.

    Ref order: x2d, (w_ih^T, w_hh^T, bias) * num_layers, w_lin^T, b_lin,
               o_ref, y_scratch * (num_layers - 1)
    Weights arrive pre-permuted to gate order [i, f, o, g] and pre-padded so 4*H is a
    multiple of 128; the batch is pre-padded to a multiple of 16.
    """

    def kernel(*refs):
        x_ref = refs[0]                          # (T*Bp, D0) f32, time-major flattened
        layer_refs = refs[1:1 + 3 * num_layers]
        wlin_ref = refs[1 + 3 * num_layers]      # (Hp_last, Lp) bf16
        blin_ref = refs[2 + 3 * num_layers]      # (1, Lp) f32
        o_ref = refs[3 + 3 * num_layers]         # (Bp, Lp) f32
        y_scratch = refs[4 + 3 * num_layers:]    # (T*Bp, Hp_l) bf16 per non-last layer

        layer_in = x_ref[...].astype(jnp.bfloat16)   # cast once; later layers already bf16

        for l in range(num_layers):
            wih = layer_refs[3 * l][...]         # (Din_p, 4Hp) bf16
            whh = layer_refs[3 * l + 1][...]     # (Hp, 4Hp) f32
            bias = layer_refs[3 * l + 2][...]    # (1, 4Hp) f32
            Hp = whh.shape[0]
            last = (l == num_layers - 1)

            # Hoisted input projection: one big-M MXU matmul per layer, off the serial
            # path.  Bp is a tile-row multiple, so every per-step row slice below is a
            # whole number of (8,128) tiles (no relayout on the recurrence).
            gates_in = (
                jnp.dot(layer_in, wih, preferred_element_type=jnp.float32) + bias
            )                                     # (T*Bp, 4Hp) f32

            h = jnp.zeros((Bp, Hp), jnp.float32)
            c = jnp.zeros((Bp, Hp), jnp.float32)
            h_max = jnp.full((Bp, Hp), -jnp.inf, jnp.float32)

            # Serial recurrence, fully unrolled (small static T).
            # TODO(synk): for large T switch to lax.fori_loop(..., unroll=4..8) to cap
            # vreg pressure while keeping LLO scheduling visibility.
            for t in range(T):
                row = t * Bp
                # tiny (Bp, Hp) @ (Hp, 4Hp) f32 matmul: keeps recurrent state full precision
                gates = gates_in[row:row + Bp, :] + jnp.dot(
                    h, whh, preferred_element_type=jnp.float32)
                # gate order [i, f, o | g]: sigmoid only where it is used (3/4 of EUP work)
                sg = jax.nn.sigmoid(gates[:, :3 * Hp])
                i_g = sg[:, 0:Hp]
                f_g = sg[:, Hp:2 * Hp]
                o_g = sg[:, 2 * Hp:3 * Hp]
                g_g = jnp.tanh(gates[:, 3 * Hp:])
                c = f_g * c + i_g * g_g
                h = o_g * jnp.tanh(c)
                if last:
                    h_max = jnp.maximum(h_max, h)          # fused AdaptiveMaxPool1d(1)
                else:
                    # aligned bf16 packed store (row offset is a multiple of 16)
                    y_scratch[l][row:row + Bp, :] = h.astype(jnp.bfloat16)

            if last:
                # fused Linear head; (Bp, Lp) output is lane/sublane-dense (full vst)
                o_ref[...] = (
                    jnp.dot(h_max.astype(jnp.bfloat16), wlin_ref[...],
                            preferred_element_type=jnp.float32)
                    + blin_ref[...]
                )
            else:
                layer_in = y_scratch[l][...]               # (T*Bp, Hp) bf16

    return kernel


# ------------------------ one-time parameter layout prep ------------------------


def prepare_params(params):
    """One-time layout transform (NOT per call): transpose, permute gates to [i,f,o,g],
    zero-pad so 4*H is a lane multiple, fuse the two biases, cast throughput matmul
    operands (W_ih, W_lin) to bf16.  W_hh stays f32 for the recurrent path."""
    layers = []
    prev_hp = None
    for idx, layer in enumerate(params["lstm"]):
        w_ih = layer["w_ih"]                  # (4H, Din)  PyTorch gate order [i, f, g, o]
        w_hh = layer["w_hh"]                  # (4H, H)
        b = layer["b_ih"] + layer["b_hh"]     # (4H,)
        H = w_hh.shape[1]
        Hp = _round_up(H, _LANES // 4)        # 4*Hp is a multiple of 128
        Din = w_ih.shape[1]
        Din_p = Din if idx == 0 else prev_hp

        def permuted_padded(w, cols_p):
            # (4H, C) -> (4Hp, cols_p); gate rows reordered i,f,g,o -> i,f,o,g; zero padded.
            i, f, g, o = w[:H], w[H:2 * H], w[2 * H:3 * H], w[3 * H:4 * H]
            out = jnp.zeros((4 * Hp, cols_p), jnp.float32)
            for k, blk in enumerate((i, f, o, g)):
                out = out.at[k * Hp:k * Hp + H, :blk.shape[1]].set(blk)
            return out

        bias_p = jnp.zeros((4 * Hp,), jnp.float32)
        for k, blk in enumerate((b[:H], b[H:2 * H], b[3 * H:4 * H], b[2 * H:3 * H])):
            bias_p = bias_p.at[k * Hp:k * Hp + H].set(blk)

        layers.append(dict(
            wih_t=jnp.transpose(permuted_padded(w_ih, Din_p)).astype(jnp.bfloat16),  # (Din_p,4Hp)
            whh_t=jnp.transpose(permuted_padded(w_hh, Hp)),                          # (Hp,4Hp) f32
            bias=bias_p[None, :],                                                    # (1,4Hp) f32
            Hp=Hp,
        ))
        prev_hp = Hp

    L = params["w_lin"].shape[0]
    H_last = params["lstm"][-1]["w_hh"].shape[1]
    Hp_last = layers[-1]["Hp"]
    Lp = _round_up(L, _LANES)
    wlin = jnp.zeros((Hp_last, Lp), jnp.float32)
    wlin = wlin.at[:H_last, :L].set(jnp.transpose(params["w_lin"]))
    blin = jnp.zeros((1, Lp), jnp.float32).at[0, :L].set(params["b_lin"])
    return dict(layers=layers, wlin_t=wlin.astype(jnp.bfloat16), blin=blin,
                latent_dim=L, latent_pad=Lp)


# ------------------------------ JAX wrapper --------------------------------

_VMEM = pl.BlockSpec(memory_space=pltpu.MemorySpace.VMEM)


def lstm_encoder_forward(x, prepped):
    """Equivalent of LSTMEncoder.forward.  x: (B, T, D0) batch-first (PyTorch layout)."""
    B, T, D0 = x.shape
    Bp = _round_up(B, _BATCH_PAD)
    layers = prepped["layers"]
    num_layers = len(layers)
    L, Lp = prepped["latent_dim"], prepped["latent_pad"]

    # Only per-call layout work: time-major, zero-pad batch, flatten to 2-D (T*Bp, D0).
    x_tm = jnp.transpose(x, (1, 0, 2)).astype(jnp.float32)            # (T, B, D0)
    x_pad = jnp.zeros((T, Bp, D0), jnp.float32).at[:, :B, :].set(x_tm)
    x2d = x_pad.reshape(T * Bp, D0)

    inputs = [x2d]
    for layer in layers:
        inputs += [layer["wih_t"], layer["whh_t"], layer["bias"]]
    inputs += [prepped["wlin_t"], prepped["blin"]]

    scratch_shapes = [
        pltpu.VMEM((T * Bp, layers[l]["Hp"]), jnp.bfloat16)
        for l in range(num_layers - 1)
    ]

    out_pad = pl.pallas_call(
        _make_encoder_kernel(num_layers, T, Bp),
        out_shape=jax.ShapeDtypeStruct((Bp, Lp), jnp.float32),
        in_specs=[_VMEM] * len(inputs),
        out_specs=_VMEM,
        scratch_shapes=scratch_shapes,
        compiler_params=pltpu.CompilerParams(
            # v5e's default scoped-VMEM limit is only 16 MiB; raise it explicitly.
            vmem_limit_bytes=32 * 1024 * 1024),
    )(*inputs)
    return out_pad[:B, :L]


# ------------------------- deterministic params ----------------------------


def init_params(key, input_size, latent_dim):
    num_layers = len(input_size)
    params = {"lstm": []}
    for i in range(num_layers):
        in_size = input_size[0] if i == 0 else input_size[i - 1]
        hid = input_size[i]
        key, k1, k2, k3, k4 = jax.random.split(key, 5)
        scale = 1.0 / jnp.sqrt(hid)
        params["lstm"].append(
            dict(
                w_ih=jax.random.uniform(k1, (4 * hid, in_size), jnp.float32, -scale, scale),
                w_hh=jax.random.uniform(k2, (4 * hid, hid), jnp.float32, -scale, scale),
                b_ih=jax.random.uniform(k3, (4 * hid,), jnp.float32, -scale, scale),
                b_hh=jax.random.uniform(k4, (4 * hid,), jnp.float32, -scale, scale),
            )
        )
    key, k1, k2 = jax.random.split(key, 3)
    h_last = input_size[-1]
    scale = 1.0 / jnp.sqrt(h_last)
    params["w_lin"] = jax.random.uniform(k1, (latent_dim, h_last), jnp.float32, -scale, scale)
    params["b_lin"] = jax.random.uniform(k2, (latent_dim,), jnp.float32, -scale, scale)
    return params


# ---------------------------- pure-JAX reference (f32) ----------------------------


def _lstm_layer_ref(x, w_ih, w_hh, b_ih, b_hh):
    B, _, _ = x.shape
    H = w_hh.shape[1]

    def step(carry, x_t):
        h, c = carry
        gates = x_t @ w_ih.T + h @ w_hh.T + b_ih + b_hh
        i_g = jax.nn.sigmoid(gates[:, :H])
        f_g = jax.nn.sigmoid(gates[:, H:2 * H])
        g_g = jnp.tanh(gates[:, 2 * H:3 * H])
        o_g = jax.nn.sigmoid(gates[:, 3 * H:])
        c = f_g * c + i_g * g_g
        h = o_g * jnp.tanh(c)
        return (h, c), h

    carry0 = (jnp.zeros((B, H), jnp.float32), jnp.zeros((B, H), jnp.float32))
    _, ys = jax.lax.scan(step, carry0, jnp.transpose(x, (1, 0, 2)))
    return jnp.transpose(ys, (1, 0, 2))


def lstm_encoder_ref(x, params):
    for layer in params["lstm"]:
        x = _lstm_layer_ref(x, layer["w_ih"], layer["w_hh"], layer["b_ih"], layer["b_hh"])
    pooled = jnp.max(x, axis=1)
    return pooled @ params["w_lin"].T + params["b_lin"]


# --------------------------------- main -------------------------------------

if __name__ == "__main__":
    # LSTMEncoder(input_size=(16, 32), latent_dim=8) on x of shape (B=2, T=8, D=16)
    input_size = (16, 32)
    latent_dim = 8
    B, T = 2, 8

    key = jax.random.PRNGKey(0)
    key, kx = jax.random.split(key)
    x = jax.random.normal(kx, (B, T, input_size[0]), dtype=jnp.float32)
    params = init_params(key, input_size, latent_dim)

    # One-time layout transform of the weights (kept out of the per-call path).
    prepped = prepare_params(params)

    fwd = jax.jit(functools.partial(lstm_encoder_forward, prepped=prepped))
    out = jax.block_until_ready(fwd(x))

    ref = lstm_encoder_ref(x, params)
    assert out.shape == (B, latent_dim), out.shape
    # Slightly relaxed tolerance: input-projection / head operands are bf16
    # (f32 accumulation); the recurrent h @ W_hh path stays f32.
    assert jnp.allclose(out, ref, atol=2e-2, rtol=2e-2), (out, ref)

    print("KERNEL_OK")
</pallas_src>

<mosaic_0001>
module attributes {stable_mosaic.version = 11 : i64} {
  func.func @kernel(%arg0: memref<128x16xf32, #tpu.memory_space<vmem>>, %arg1: memref<16x128xbf16, #tpu.memory_space<vmem>>, %arg2: memref<32x128xf32, #tpu.memory_space<vmem>>, %arg3: memref<1x128xf32, #tpu.memory_space<vmem>>, %arg4: memref<32x128xbf16, #tpu.memory_space<vmem>>, %arg5: memref<32x128xf32, #tpu.memory_space<vmem>>, %arg6: memref<1x128xf32, #tpu.memory_space<vmem>>, %arg7: memref<32x128xbf16, #tpu.memory_space<vmem>>, %arg8: memref<1x128xf32, #tpu.memory_space<vmem>>, %arg9: memref<16x128xf32, #tpu.memory_space<vmem>>, %arg10: memref<128x32xbf16, #tpu.memory_space<vmem>>) attributes {dimension_semantics = [], scalar_prefetch = 0 : i64, scratch_operands = 1 : i64, tpu.core_type = #tpu.core_type<tc>} {
    %c0 = arith.constant 0 : index
    %c0_0 = arith.constant 0 : index
    %0 = vector.load %arg0[%c0, %c0_0] : memref<128x16xf32, #tpu.memory_space<vmem>>, vector<128x16xf32>
    %1 = arith.truncf %0 : vector<128x16xf32> to vector<128x16xbf16>
    %c0_1 = arith.constant 0 : index
    %c0_2 = arith.constant 0 : index
    %2 = vector.load %arg1[%c0_1, %c0_2] : memref<16x128xbf16, #tpu.memory_space<vmem>>, vector<16x128xbf16>
    %c0_3 = arith.constant 0 : index
    %c0_4 = arith.constant 0 : index
    %3 = vector.load %arg2[%c0_3, %c0_4] : memref<32x128xf32, #tpu.memory_space<vmem>>, vector<32x128xf32>
    %c0_5 = arith.constant 0 : index
    %c0_6 = arith.constant 0 : index
    %4 = vector.load %arg3[%c0_5, %c0_6] : memref<1x128xf32, #tpu.memory_space<vmem>>, vector<1x128xf32>
    %cst = arith.constant dense<0.000000e+00> : vector<128x128xf32>
    %5 = tpu.matmul %1, %2, %cst {dimension_numbers = #tpu.dot_dimension_numbers<[1], [0], [0], [1], [0, 0, 1, 1], [], []>} : vector<128x16xbf16>, vector<16x128xbf16>, vector<128x128xf32> -> vector<128x128xf32>
    %6 = vector.broadcast %4 : vector<1x128xf32> to vector<128x128xf32>
    %7 = arith.addf %5, %6 : vector<128x128xf32>
    %cst_7 = arith.constant 0.000000e+00 : f32
    %8 = vector.broadcast %cst_7 : f32 to vector<16x32xf32>
    %cst_8 = arith.constant 0.000000e+00 : f32
    %9 = vector.broadcast %cst_8 : f32 to vector<16x32xf32>
    %10 = vector.extract_strided_slice %7 {offsets = [0, 0], sizes = [16, 128], strides = [1, 1]} : vector<128x128xf32> to vector<16x128xf32>
    %cst_9 = arith.constant dense<0.000000e+00> : vector<16x128xf32>
    %11 = tpu.matmul %8, %3, %cst_9 {dimension_numbers = #tpu.dot_dimension_numbers<[1], [0], [0], [1], [0, 0, 1, 1], [], []>} : vector<16x32xf32>, vector<32x128xf32>, vector<16x128xf32> -> vector<16x128xf32>
    %12 = arith.addf %10, %11 : vector<16x128xf32>
    %13 = vector.extract_strided_slice %12 {offsets = [0, 0], sizes = [16, 96], strides = [1, 1]} : vector<16x128xf32> to vector<16x96xf32>
    %14 = arith.negf %13 : vector<16x96xf32>
    %15 = math.exp %14 : vector<16x96xf32>
    %cst_10 = arith.constant 1.000000e+00 : f32
    %16 = vector.broadcast %cst_10 : f32 to vector<16x96xf32>
    %17 = arith.addf %16, %15 : vector<16x96xf32>
    %18 = arith.divf %16, %17 : vector<16x96xf32>
    %19 = vector.extract_strided_slice %18 {offsets = [0, 0], sizes = [16, 32], strides = [1, 1]} : vector<16x96xf32> to vector<16x32xf32>
    %20 = vector.extract_strided_slice %18 {offsets = [0, 32], sizes = [16, 32], strides = [1, 1]} : vector<16x96xf32> to vector<16x32xf32>
    %21 = vector.extract_strided_slice %18 {offsets = [0, 64], sizes = [16, 32], strides = [1, 1]} : vector<16x96xf32> to vector<16x32xf32>
    %22 = vector.extract_strided_slice %12 {offsets = [0, 96], sizes = [16, 32], strides = [1, 1]} : vector<16x128xf32> to vector<16x32xf32>
    %23 = math.tanh %22 : vector<16x32xf32>
    %24 = arith.mulf %20, %9 : vector<16x32xf32>
    %25 = arith.mulf %19, %23 : vector<16x32xf32>
    %26 = arith.addf %24, %25 : vector<16x32xf32>
    %27 = math.tanh %26 : vector<16x32xf32>
    %28 = arith.mulf %21, %27 : vector<16x32xf32>
    %29 = arith.truncf %28 : vector<16x32xf32> to vector<16x32xbf16>
    %c0_11 = arith.constant 0 : index
    %c0_12 = arith.constant 0 : index
    %30 = vector.load %arg10[%c0_11, %c0_12] : memref<128x32xbf16, #tpu.memory_space<vmem>>, vector<16x32xbf16>
    tpu.vector_store %arg10[%c0_11, %c0_12], %29 {strides = array<i32>} : memref<128x32xbf16, #tpu.memory_space<vmem>>, vector<16x32xbf16>,
    %31 = vector.extract_strided_slice %7 {offsets = [16, 0], sizes = [16, 128], strides = [1, 1]} : vector<128x128xf32> to vector<16x128xf32>
    %cst_13 = arith.constant dense<0.000000e+00> : vector<16x128xf32>
    %32 = tpu.matmul %28, %3, %cst_13 {dimension_numbers = #tpu.dot_dimension_numbers<[1], [0], [0], [1], [0, 0, 1, 1], [], []>} : vector<16x32xf32>, vector<32x128xf32>, vector<16x128xf32> -> vector<16x128xf32>
    %33 = arith.addf %31, %32 : vector<16x128xf32>
    %34 = vector.extract_strided_slice %33 {offsets = [0, 0], sizes = [16, 96], strides = [1, 1]} : vector<16x128xf32> to vector<16x96xf32>
    %35 = arith.negf %34 : vector<16x96xf32>
    %36 = math.exp %35 : vector<16x96xf32>
    %cst_14 = arith.constant 1.000000e+00 : f32
    %37 = vector.broadcast %cst_14 : f32 to vector<16x96xf32>
    %38 = arith.addf %37, %36 : vector<16x96xf32>
    %39 = arith.divf %37, %38 : vector<16x96xf32>
    %40 = vector.extract_strided_slice %39 {offsets = [0, 0], sizes = [16, 32], strides = [1, 1]} : vector<16x96xf32> to vector<16x32xf32>
    %41 = vector.extract_strided_slice %39 {offsets = [0, 32], sizes = [16, 32], strides = [1, 1]} : vector<16x96xf32> to vector<16x32xf32>
    %42 = vector.extract_strided_slice %39 {offsets = [0, 64], sizes = [16, 32], strides = [1, 1]} : vector<16x96xf32> to vector<16x32xf32>
    %43 = vector.extract_strided_slice %33 {offsets = [0, 96], sizes = [16, 32], strides = [1, 1]} : vector<16x128xf32> to vector<16x32xf32>
    %44 = math.tanh %43 : vector<16x32xf32>
    %45 = arith.mulf %41, %26 : vector<16x32xf32>
    %46 = arith.mulf %40, %44 : vector<16x32xf32>
    %47 = arith.addf %45, %46 : vector<16x32xf32>
    %48 = math.tanh %47 : vector<16x32xf32>
    %49 = arith.mulf %42, %48 : vector<16x32xf32>
    %50 = arith.truncf %49 : vector<16x32xf32> to vector<16x32xbf16>
    %c16 = arith.constant 16 : index
    %c0_15 = arith.constant 0 : index
    %51 = vector.load %arg10[%c16, %c0_15] : memref<128x32xbf16, #tpu.memory_space<vmem>>, vector<16x32xbf16>
    tpu.vector_store %arg10[%c16, %c0_15], %50 {strides = array<i32>} : memref<128x32xbf16, #tpu.memory_space<vmem>>, vector<16x32xbf16>,
    %52 = vector.extract_strided_slice %7 {offsets = [32, 0], sizes = [16, 128], strides = [1, 1]} : vector<128x128xf32> to vector<16x128xf32>
    %cst_16 = arith.constant dense<0.000000e+00> : vector<16x128xf32>
    %53 = tpu.matmul %49, %3, %cst_16 {dimension_numbers = #tpu.dot_dimension_numbers<[1], [0], [0], [1], [0, 0, 1, 1], [], []>} : vector<16x32xf32>, vector<32x128xf32>, vector<16x128xf32> -> vector<16x128xf32>
    %54 = arith.addf %52, %53 : vector<16x128xf32>
    %55 = vector.extract_strided_slice %54 {offsets = [0, 0], sizes = [16, 96], strides = [1, 1]} : vector<16x128xf32> to vector<16x96xf32>
    %56 = arith.negf %55 : vector<16x96xf32>
    %57 = math.exp %56 : vector<16x96xf32>
    %cst_17 = arith.constant 1.000000e+00 : f32
    %58 = vector.broadcast %cst_17 : f32 to vector<16x96xf32>
    %59 = arith.addf %58, %57 : vector<16x96xf32>
    %60 = arith.divf %58, %59 : vector<16x96xf32>
    %61 = vector.extract_strided_slice %60 {offsets = [0, 0], sizes = [16, 32], strides = [1, 1]} : vector<16x96xf32> to vector<16x32xf32>
    %62 = vector.extract_strided_slice %60 {offsets = [0, 32], sizes = [16, 32], strides = [1, 1]} : vector<16x96xf32> to vector<16x32xf32>
    %63 = vector.extract_strided_slice %60 {offsets = [0, 64], sizes = [16, 32], strides = [1, 1]} : vector<16x96xf32> to vector<16x32xf32>
    %64 = vector.extract_strided_slice %54 {offsets = [0, 96], sizes = [16, 32], strides = [1, 1]} : vector<16x128xf32> to vector<16x32xf32>
    %65 = math.tanh %64 : vector<16x32xf32>
    %66 = arith.mulf %62, %47 : vector<16x32xf32>
    %67 = arith.mulf %61, %65 : vector<16x32xf32>
    %68 = arith.addf %66, %67 : vector<16x32xf32>
    %69 = math.tanh %68 : vector<16x32xf32>
    %70 = arith.mulf %63, %69 : vector<16x32xf32>
    %71 = arith.truncf %70 : vector<16x32xf32> to vector<16x32xbf16>
    %c32 = arith.constant 32 : index
    %c0_18 = arith.constant 0 : index
    %72 = vector.load %arg10[%c32, %c0_18] : memref<128x32xbf16, #tpu.memory_space<vmem>>, vector<16x32xbf16>
    tpu.vector_store %arg10[%c32, %c0_18], %71 {strides = array<i32>} : memref<128x32xbf16, #tpu.memory_space<vmem>>, vector<16x32xbf16>,
    %73 = vector.extract_strided_slice %7 {offsets = [48, 0], sizes = [16, 128], strides = [1, 1]} : vector<128x128xf32> to vector<16x128xf32>
    %cst_19 = arith.constant dense<0.000000e+00> : vector<16x128xf32>
    %74 = tpu.matmul %70, %3, %cst_19 {dimension_numbers = #tpu.dot_dimension_numbers<[1], [0], [0], [1], [0, 0, 1, 1], [], []>} : vector<16x32xf32>, vector<32x128xf32>, vector<16x128xf32> -> vector<16x128xf32>
    %75 = arith.addf %73, %74 : vector<16x128xf32>
    %76 = vector.extract_strided_slice %75 {offsets = [0, 0], sizes = [16, 96], strides = [1, 1]} : vector<16x128xf32> to vector<16x96xf32>
    %77 = arith.negf %76 : vector<16x96xf32>
    %78 = math.exp %77 : vector<16x96xf32>
    %cst_20 = arith.constant 1.000000e+00 : f32
    %79 = vector.broadcast %cst_20 : f32 to vector<16x96xf32>
    %80 = arith.addf %79, %78 : vector<16x96xf32>
    %81 = arith.divf %79, %80 : vector<16x96xf32>
    %82 = vector.extract_strided_slice %81 {offsets = [0, 0], sizes = [16, 32], strides = [1, 1]} : vector<16x96xf32> to vector<16x32xf32>
    %83 = vector.extract_strided_slice %81 {offsets = [0, 32], sizes = [16, 32], strides = [1, 1]} : vector<16x96xf32> to vector<16x32xf32>
    %84 = vector.extract_strided_slice %81 {offsets = [0, 64], sizes = [16, 32], strides = [1, 1]} : vector<16x96xf32> to vector<16x32xf32>
    %85 = vector.extract_strided_slice %75 {offsets = [0, 96], sizes = [16, 32], strides = [1, 1]} : vector<16x128xf32> to vector<16x32xf32>
    %86 = math.tanh %85 : vector<16x32xf32>
    %87 = arith.mulf %83, %68 : vector<16x32xf32>
    %88 = arith.mulf %82, %86 : vector<16x32xf32>
    %89 = arith.addf %87, %88 : vector<16x32xf32>
    %90 = math.tanh %89 : vector<16x32xf32>
    %91 = arith.mulf %84, %90 : vector<16x32xf32>
    %92 = arith.truncf %91 : vector<16x32xf32> to vector<16x32xbf16>
    %c48 = arith.constant 48 : index
    %c0_21 = arith.constant 0 : index
    %93 = vector.load %arg10[%c48, %c0_21] : memref<128x32xbf16, #tpu.memory_space<vmem>>, vector<16x32xbf16>
    tpu.vector_store %arg10[%c48, %c0_21], %92 {strides = array<i32>} : memref<128x32xbf16, #tpu.memory_space<vmem>>, vector<16x32xbf16>,
    %94 = vector.extract_strided_slice %7 {offsets = [64, 0], sizes = [16, 128], strides = [1, 1]} : vector<128x128xf32> to vector<16x128xf32>
    %cst_22 = arith.constant dense<0.000000e+00> : vector<16x128xf32>
    %95 = tpu.matmul %91, %3, %cst_22 {dimension_numbers = #tpu.dot_dimension_numbers<[1], [0], [0], [1], [0, 0, 1, 1], [], []>} : vector<16x32xf32>, vector<32x128xf32>, vector<16x128xf32> -> vector<16x128xf32>
    %96 = arith.addf %94, %95 : vector<16x128xf32>
    %97 = vector.extract_strided_slice %96 {offsets = [0, 0], sizes = [16, 96], strides = [1, 1]} : vector<16x128xf32> to vector<16x96xf32>
    %98 = arith.negf %97 : vector<16x96xf32>
    %99 = math.exp %98 : vector<16x96xf32>
    %cst_23 = arith.constant 1.000000e+00 : f32
    %100 = vector.broadcast %cst_23 : f32 to vector<16x96xf32>
    %101 = arith.addf %100, %99 : vector<16x96xf32>
    %102 = arith.divf %100, %101 : vector<16x96xf32>
    %103 = vector.extract_strided_slice %102 {offsets = [0, 0], sizes = [16, 32], strides = [1, 1]} : vector<16x96xf32> to vector<16x32xf32>
    %104 = vector.extract_strided_slice %102 {offsets = [0, 32], sizes = [16, 32], strides = [1, 1]} : vector<16x96xf32> to vector<16x32xf32>
    %105 = vector.extract_strided_slice %102 {offsets = [0, 64], sizes = [16, 32], strides = [1, 1]} : vector<16x96xf32> to vector<16x32xf32>
    %106 = vector.extract_strided_slice %96 {offsets = [0, 96], sizes = [16, 32], strides = [1, 1]} : vector<16x128xf32> to vector<16x32xf32>
    %107 = math.tanh %106 : vector<16x32xf32>
    %108 = arith.mulf %104, %89 : vector<16x32xf32>
    %109 = arith.mulf %103, %107 : vector<16x32xf32>
    %110 = arith.addf %108, %109 : vector<16x32xf32>
    %111 = math.tanh %110 : vector<16x32xf32>
    %112 = arith.mulf %105, %111 : vector<16x32xf32>
    %113 = arith.truncf %112 : vector<16x32xf32> to vector<16x32xbf16>
    %c64 = arith.constant 64 : index
    %c0_24 = arith.constant 0 : index
    %114 = vector.load %arg10[%c64, %c0_24] : memref<128x32xbf16, #tpu.memory_space<vmem>>, vector<16x32xbf16>
    tpu.vector_store %arg10[%c64, %c0_24], %113 {strides = array<i32>} : memref<128x32xbf16, #tpu.memory_space<vmem>>, vector<16x32xbf16>,
    %115 = vector.extract_strided_slice %7 {offsets = [80, 0], sizes = [16, 128], strides = [1, 1]} : vector<128x128xf32> to vector<16x128xf32>
    %cst_25 = arith.constant dense<0.000000e+00> : vector<16x128xf32>
    %116 = tpu.matmul %112, %3, %cst_25 {dimension_numbers = #tpu.dot_dimension_numbers<[1], [0], [0], [1], [0, 0, 1, 1], [], []>} : vector<16x32xf32>, vector<32x128xf32>, vector<16x128xf32> -> vector<16x128xf32>
    %117 = arith.addf %115, %116 : vector<16x128xf32>
    %118 = vector.extract_strided_slice %117 {offsets = [0, 0], sizes = [16, 96], strides = [1, 1]} : vector<16x128xf32> to vector<16x96xf32>
    %119 = arith.negf %118 : vector<16x96xf32>
    %120 = math.exp %119 : vector<16x96xf32>
    %cst_26 = arith.constant 1.000000e+00 : f32
    %121 = vector.broadcast %cst_26 : f32 to vector<16x96xf32>
    %122 = arith.addf %121, %120 : vector<16x96xf32>
    %123 = arith.divf %121, %122 : vector<16x96xf32>
    %124 = vector.extract_strided_slice %123 {offsets = [0, 0], sizes = [16, 32], strides = [1, 1]} : vector<16x96xf32> to vector<16x32xf32>
    %125 = vector.extract_strided_slice %123 {offsets = [0, 32], sizes = [16, 32], strides = [1, 1]} : vector<16x96xf32> to vector<16x32xf32>
    %126 = vector.extract_strided_slice %123 {offsets = [0, 64], sizes = [16, 32], strides = [1, 1]} : vector<16x96xf32> to vector<16x32xf32>
    %127 = vector.extract_strided_slice %117 {offsets = [0, 96], sizes = [16, 32], strides = [1, 1]} : vector<16x128xf32> to vector<16x32xf32>
    %128 = math.tanh %127 : vector<16x32xf32>
    %129 = arith.mulf %125, %110 : vector<16x32xf32>
    %130 = arith.mulf %124, %128 : vector<16x32xf32>
    %131 = arith.addf %129, %130 : vector<16x32xf32>
    %132 = math.tanh %131 : vector<16x32xf32>
    %133 = arith.mulf %126, %132 : vector<16x32xf32>
    %134 = arith.truncf %133 : vector<16x32xf32> to vector<16x32xbf16>
    %c80 = arith.constant 80 : index
    %c0_27 = arith.constant 0 : index
    %135 = vector.load %arg10[%c80, %c0_27] : memref<128x32xbf16, #tpu.memory_space<vmem>>, vector<16x32xbf16>
    tpu.vector_store %arg10[%c80, %c0_27], %134 {strides = array<i32>} : memref<128x32xbf16, #tpu.memory_space<vmem>>, vector<16x32xbf16>,
    %136 = vector.extract_strided_slice %7 {offsets = [96, 0], sizes = [16, 128], strides = [1, 1]} : vector<128x128xf32> to vector<16x128xf32>
    %cst_28 = arith.constant dense<0.000000e+00> : vector<16x128xf32>
    %137 = tpu.matmul %133, %3, %cst_28 {dimension_numbers = #tpu.dot_dimension_numbers<[1], [0], [0], [1], [0, 0, 1, 1], [], []>} : vector<16x32xf32>, vector<32x128xf32>, vector<16x128xf32> -> vector<16x128xf32>
    %138 = arith.addf %136, %137 : vector<16x128xf32>
    %139 = vector.extract_strided_slice %138 {offsets = [0, 0], sizes = [16, 96], strides = [1, 1]} : vector<16x128xf32> to vector<16x96xf32>
    %140 = arith.negf %139 : vector<16x96xf32>
    %141 = math.exp %140 : vector<16x96xf32>
    %cst_29 = arith.constant 1.000000e+00 : f32
    %142 = vector.broadcast %cst_29 : f32 to vector<16x96xf32>
    %143 = arith.addf %142, %141 : vector<16x96xf32>
    %144 = arith.divf %142, %143 : vector<16x96xf32>
    %145 = vector.extract_strided_slice %144 {offsets = [0, 0], sizes = [16, 32], strides = [1, 1]} : vector<16x96xf32> to vector<16x32xf32>
    %146 = vector.extract_strided_slice %144 {offsets = [0, 32], sizes = [16, 32], strides = [1, 1]} : vector<16x96xf32> to vector<16x32xf32>
    %147 = vector.extract_strided_slice %144 {offsets = [0, 64], sizes = [16, 32], strides = [1, 1]} : vector<16x96xf32> to vector<16x32xf32>
    %148 = vector.extract_strided_slice %138 {offsets = [0, 96], sizes = [16, 32], strides = [1, 1]} : vector<16x128xf32> to vector<16x32xf32>
    %149 = math.tanh %148 : vector<16x32xf32>
    %150 = arith.mulf %146, %131 : vector<16x32xf32>
    %151 = arith.mulf %145, %149 : vector<16x32xf32>
    %152 = arith.addf %150, %151 : vector<16x32xf32>
    %153 = math.tanh %152 : vector<16x32xf32>
    %154 = arith.mulf %147, %153 : vector<16x32xf32>
    %155 = arith.truncf %154 : vector<16x32xf32> to vector<16x32xbf16>
    %c96 = arith.constant 96 : index
    %c0_30 = arith.constant 0 : index
    %156 = vector.load %arg10[%c96, %c0_30] : memref<128x32xbf16, #tpu.memory_space<vmem>>, vector<16x32xbf16>
    tpu.vector_store %arg10[%c96, %c0_30], %155 {strides = array<i32>} : memref<128x32xbf16, #tpu.memory_space<vmem>>, vector<16x32xbf16>,
    %157 = vector.extract_strided_slice %7 {offsets = [112, 0], sizes = [16, 128], strides = [1, 1]} : vector<128x128xf32> to vector<16x128xf32>
    %cst_31 = arith.constant dense<0.000000e+00> : vector<16x128xf32>
    %158 = tpu.matmul %154, %3, %cst_31 {dimension_numbers = #tpu.dot_dimension_numbers<[1], [0], [0], [1], [0, 0, 1, 1], [], []>} : vector<16x32xf32>, vector<32x128xf32>, vector<16x128xf32> -> vector<16x128xf32>
    %159 = arith.addf %157, %158 : vector<16x128xf32>
    %160 = vector.extract_strided_slice %159 {offsets = [0, 0], sizes = [16, 96], strides = [1, 1]} : vector<16x128xf32> to vector<16x96xf32>
    %161 = arith.negf %160 : vector<16x96xf32>
    %162 = math.exp %161 : vector<16x96xf32>
    %cst_32 = arith.constant 1.000000e+00 : f32
    %163 = vector.broadcast %cst_32 : f32 to vector<16x96xf32>
    %164 = arith.addf %163, %162 : vector<16x96xf32>
    %165 = arith.divf %163, %164 : vector<16x96xf32>
    %166 = vector.extract_strided_slice %165 {offsets = [0, 0], sizes = [16, 32], strides = [1, 1]} : vector<16x96xf32> to vector<16x32xf32>
    %167 = vector.extract_strided_slice %165 {offsets = [0, 32], sizes = [16, 32], strides = [1, 1]} : vector<16x96xf32> to vector<16x32xf32>
    %168 = vector.extract_strided_slice %165 {offsets = [0, 64], sizes = [16, 32], strides = [1, 1]} : vector<16x96xf32> to vector<16x32xf32>
    %169 = vector.extract_strided_slice %159 {offsets = [0, 96], sizes = [16, 32], strides = [1, 1]} : vector<16x128xf32> to vector<16x32xf32>
    %170 = math.tanh %169 : vector<16x32xf32>
    %171 = arith.mulf %167, %152 : vector<16x32xf32>
    %172 = arith.mulf %166, %170 : vector<16x32xf32>
    %173 = arith.addf %171, %172 : vector<16x32xf32>
    %174 = math.tanh %173 : vector<16x32xf32>
    %175 = arith.mulf %168, %174 : vector<16x32xf32>
    %176 = arith.truncf %175 : vector<16x32xf32> to vector<16x32xbf16>
    %c112 = arith.constant 112 : index
    %c0_33 = arith.constant 0 : index
    %177 = vector.load %arg10[%c112, %c0_33] : memref<128x32xbf16, #tpu.memory_space<vmem>>, vector<16x32xbf16>
    tpu.vector_store %arg10[%c112, %c0_33], %176 {strides = array<i32>} : memref<128x32xbf16, #tpu.memory_space<vmem>>, vector<16x32xbf16>,
    %c0_34 = arith.constant 0 : index
    %c0_35 = arith.constant 0 : index
    %178 = vector.load %arg10[%c0_34, %c0_35] : memref<128x32xbf16, #tpu.memory_space<vmem>>, vector<128x32xbf16>
    %c0_36 = arith.constant 0 : index
    %c0_37 = arith.constant 0 : index
    %179 = vector.load %arg4[%c0_36, %c0_37] : memref<32x128xbf16, #tpu.memory_space<vmem>>, vector<32x128xbf16>
    %c0_38 = arith.constant 0 : index
    %c0_39 = arith.constant 0 : index
    %180 = vector.load %arg5[%c0_38, %c0_39] : memref<32x128xf32, #tpu.memory_space<vmem>>, vector<32x128xf32>
    %c0_40 = arith.constant 0 : index
    %c0_41 = arith.constant 0 : index
    %181 = vector.load %arg6[%c0_40, %c0_41] : memref<1x128xf32, #tpu.memory_space<vmem>>, vector<1x128xf32>
    %cst_42 = arith.constant dense<0.000000e+00> : vector<128x128xf32>
    %182 = tpu.matmul %178, %179, %cst_42 {dimension_numbers = #tpu.dot_dimension_numbers<[1], [0], [0], [1], [0, 0, 1, 1], [], []>} : vector<128x32xbf16>, vector<32x128xbf16>, vector<128x128xf32> -> vector<128x128xf32>
    %183 = vector.broadcast %181 : vector<1x128xf32> to vector<128x128xf32>
    %184 = arith.addf %182, %183 : vector<128x128xf32>
    %cst_43 = arith.constant 0.000000e+00 : f32
    %185 = vector.broadcast %cst_43 : f32 to vector<16x32xf32>
    %cst_44 = arith.constant 0.000000e+00 : f32
    %186 = vector.broadcast %cst_44 : f32 to vector<16x32xf32>
    %cst_45 = arith.constant 0xFF800000 : f32
    %187 = vector.broadcast %cst_45 : f32 to vector<16x32xf32>
    %188 = vector.extract_strided_slice %184 {offsets = [0, 0], sizes = [16, 128], strides = [1, 1]} : vector<128x128xf32> to vector<16x128xf32>
    %cst_46 = arith.constant dense<0.000000e+00> : vector<16x128xf32>
    %189 = tpu.matmul %185, %180, %cst_46 {dimension_numbers = #tpu.dot_dimension_numbers<[1], [0], [0], [1], [0, 0, 1, 1], [], []>} : vector<16x32xf32>, vector<32x128xf32>, vector<16x128xf32> -> vector<16x128xf32>
    %190 = arith.addf %188, %189 : vector<16x128xf32>
    %191 = vector.extract_strided_slice %190 {offsets = [0, 0], sizes = [16, 96], strides = [1, 1]} : vector<16x128xf32> to vector<16x96xf32>
    %192 = arith.negf %191 : vector<16x96xf32>
    %193 = math.exp %192 : vector<16x96xf32>
    %cst_47 = arith.constant 1.000000e+00 : f32
    %194 = vector.broadcast %cst_47 : f32 to vector<16x96xf32>
    %195 = arith.addf %194, %193 : vector<16x96xf32>
    %196 = arith.divf %194, %195 : vector<16x96xf32>
    %197 = vector.extract_strided_slice %196 {offsets = [0, 0], sizes = [16, 32], strides = [1, 1]} : vector<16x96xf32> to vector<16x32xf32>
    %198 = vector.extract_strided_slice %196 {offsets = [0, 32], sizes = [16, 32], strides = [1, 1]} : vector<16x96xf32> to vector<16x32xf32>
    %199 = vector.extract_strided_slice %196 {offsets = [0, 64], sizes = [16, 32], strides = [1, 1]} : vector<16x96xf32> to vector<16x32xf32>
    %200 = vector.extract_strided_slice %190 {offsets = [0, 96], sizes = [16, 32], strides = [1, 1]} : vector<16x128xf32> to vector<16x32xf32>
    %201 = math.tanh %200 : vector<16x32xf32>
    %202 = arith.mulf %198, %186 : vector<16x32xf32>
    %203 = arith.mulf %197, %201 : vector<16x32xf32>
    %204 = arith.addf %202, %203 : vector<16x32xf32>
    %205 = math.tanh %204 : vector<16x32xf32>
    %206 = arith.mulf %199, %205 : vector<16x32xf32>
    %207 = arith.maximumf %187, %206 : vector<16x32xf32>
    %208 = vector.extract_strided_slice %184 {offsets = [16, 0], sizes = [16, 128], strides = [1, 1]} : vector<128x128xf32> to vector<16x128xf32>
    %cst_48 = arith.constant dense<0.000000e+00> : vector<16x128xf32>
    %209 = tpu.matmul %206, %180, %cst_48 {dimension_numbers = #tpu.dot_dimension_numbers<[1], [0], [0], [1], [0, 0, 1, 1], [], []>} : vector<16x32xf32>, vector<32x128xf32>, vector<16x128xf32> -> vector<16x128xf32>
    %210 = arith.addf %208, %209 : vector<16x128xf32>
    %211 = vector.extract_strided_slice %210 {offsets = [0, 0], sizes = [16, 96], strides = [1, 1]} : vector<16x128xf32> to vector<16x96xf32>
    %212 = arith.negf %211 : vector<16x96xf32>
    %213 = math.exp %212 : vector<16x96xf32>
    %cst_49 = arith.constant 1.000000e+00 : f32
    %214 = vector.broadcast %cst_49 : f32 to vector<16x96xf32>
    %215 = arith.addf %214, %213 : vector<16x96xf32>
    %216 = arith.divf %214, %215 : vector<16x96xf32>
    %217 = vector.extract_strided_slice %216 {offsets = [0, 0], sizes = [16, 32], strides = [1, 1]} : vector<16x96xf32> to vector<16x32xf32>
    %218 = vector.extract_strided_slice %216 {offsets = [0, 32], sizes = [16, 32], strides = [1, 1]} : vector<16x96xf32> to vector<16x32xf32>
    %219 = vector.extract_strided_slice %216 {offsets = [0, 64], sizes = [16, 32], strides = [1, 1]} : vector<16x96xf32> to vector<16x32xf32>
    %220 = vector.extract_strided_slice %210 {offsets = [0, 96], sizes = [16, 32], strides = [1, 1]} : vector<16x128xf32> to vector<16x32xf32>
    %221 = math.tanh %220 : vector<16x32xf32>
    %222 = arith.mulf %218, %204 : vector<16x32xf32>
    %223 = arith.mulf %217, %221 : vector<16x32xf32>
    %224 = arith.addf %222, %223 : vector<16x32xf32>
    %225 = math.tanh %224 : vector<16x32xf32>
    %226 = arith.mulf %219, %225 : vector<16x32xf32>
    %227 = arith.maximumf %207, %226 : vector<16x32xf32>
    %228 = vector.extract_strided_slice %184 {offsets = [32, 0], sizes = [16, 128], strides = [1, 1]} : vector<128x128xf32> to vector<16x128xf32>
    %cst_50 = arith.constant dense<0.000000e+00> : vector<16x128xf32>
    %229 = tpu.matmul %226, %180, %cst_50 {dimension_numbers = #tpu.dot_dimension_numbers<[1], [0], [0], [1], [0, 0, 1, 1], [], []>} : vector<16x32xf32>, vector<32x128xf32>, vector<16x128xf32> -> vector<16x128xf32>
    %230 = arith.addf %228, %229 : vector<16x128xf32>
    %231 = vector.extract_strided_slice %230 {offsets = [0, 0], sizes = [16, 96], strides = [1, 1]} : vector<16x128xf32> to vector<16x96xf32>
    %232 = arith.negf %231 : vector<16x96xf32>
    %233 = math.exp %232 : vector<16x96xf32>
    %cst_51 = arith.constant 1.000000e+00 : f32
    %234 = vector.broadcast %cst_51 : f32 to vector<16x96xf32>
    %235 = arith.addf %234, %233 : vector<16x96xf32>
    %236 = arith.divf %234, %235 : vector<16x96xf32>
    %237 = vector.extract_strided_slice %236 {offsets = [0, 0], sizes = [16, 32], strides = [1, 1]} : vector<16x96xf32> to vector<16x32xf32>
    %238 = vector.extract_strided_slice %236 {offsets = [0, 32], sizes = [16, 32], strides = [1, 1]} : vector<16x96xf32> to vector<16x32xf32>
    %239 = vector.extract_strided_slice %236 {offsets = [0, 64], sizes = [16, 32], strides = [1, 1]} : vector<16x96xf32> to vector<16x32xf32>
    %240 = vector.extract_strided_slice %230 {offsets = [0, 96], sizes = [16, 32], strides = [1, 1]} : vector<16x128xf32> to vector<16x32xf32>
    %241 = math.tanh %240 : vector<16x32xf32>
    %242 = arith.mulf %238, %224 : vector<16x32xf32>
    %243 = arith.mulf %237, %241 : vector<16x32xf32>
    %244 = arith.addf %242, %243 : vector<16x32xf32>
    %245 = math.tanh %244 : vector<16x32xf32>
    %246 = arith.mulf %239, %245 : vector<16x32xf32>
    %247 = arith.maximumf %227, %246 : vector<16x32xf32>
    %248 = vector.extract_strided_slice %184 {offsets = [48, 0], sizes = [16, 128], strides = [1, 1]} : vector<128x128xf32> to vector<16x128xf32>
    %cst_52 = arith.constant dense<0.000000e+00> : vector<16x128xf32>
    %249 = tpu.matmul %246, %180, %cst_52 {dimension_numbers = #tpu.dot_dimension_numbers<[1], [0], [0], [1], [0, 0, 1, 1], [], []>} : vector<16x32xf32>, vector<32x128xf32>, vector<16x128xf32> -> vector<16x128xf32>
    %250 = arith.addf %248, %249 : vector<16x128xf32>
    %251 = vector.extract_strided_slice %250 {offsets = [0, 0], sizes = [16, 96], strides = [1, 1]} : vector<16x128xf32> to vector<16x96xf32>
    %252 = arith.negf %251 : vector<16x96xf32>
    %253 = math.exp %252 : vector<16x96xf32>
    %cst_53 = arith.constant 1.000000e+00 : f32
    %254 = vector.broadcast %cst_53 : f32 to vector<16x96xf32>
    %255 = arith.addf %254, %253 : vector<16x96xf32>
    %256 = arith.divf %254, %255 : vector<16x96xf32>
    %257 = vector.extract_strided_slice %256 {offsets = [0, 0], sizes = [16, 32], strides = [1, 1]} : vector<16x96xf32> to vector<16x32xf32>
    %258 = vector.extract_strided_slice %256 {offsets = [0, 32], sizes = [16, 32], strides = [1, 1]} : vector<16x96xf32> to vector<16x32xf32>
    %259 = vector.extract_strided_slice %256 {offsets = [0, 64], sizes = [16, 32], strides = [1, 1]} : vector<16x96xf32> to vector<16x32xf32>
    %260 = vector.extract_strided_slice %250 {offsets = [0, 96], sizes = [16, 32], strides = [1, 1]} : vector<16x128xf32> to vector<16x32xf32>
    %261 = math.tanh %260 : vector<16x32xf32>
    %262 = arith.mulf %258, %244 : vector<16x32xf32>
    %263 = arith.mulf %257, %261 : vector<16x32xf32>
    %264 = arith.addf %262, %263 : vector<16x32xf32>
    %265 = math.tanh %264 : vector<16x32xf32>
    %266 = arith.mulf %259, %265 : vector<16x32xf32>
    %267 = arith.maximumf %247, %266 : vector<16x32xf32>
    %268 = vector.extract_strided_slice %184 {offsets = [64, 0], sizes = [16, 128], strides = [1, 1]} : vector<128x128xf32> to vector<16x128xf32>
    %cst_54 = arith.constant dense<0.000000e+00> : vector<16x128xf32>
    %269 = tpu.matmul %266, %180, %cst_54 {dimension_numbers = #tpu.dot_dimension_numbers<[1], [0], [0], [1], [0, 0, 1, 1], [], []>} : vector<16x32xf32>, vector<32x128xf32>, vector<16x128xf32> -> vector<16x128xf32>
    %270 = arith.addf %268, %269 : vector<16x128xf32>
    %271 = vector.extract_strided_slice %270 {offsets = [0, 0], sizes = [16, 96], strides = [1, 1]} : vector<16x128xf32> to vector<16x96xf32>
    %272 = arith.negf %271 : vector<16x96xf32>
    %273 = math.exp %272 : vector<16x96xf32>
    %cst_55 = arith.constant 1.000000e+00 : f32
    %274 = vector.broadcast %cst_55 : f32 to vector<16x96xf32>
    %275 = arith.addf %274, %273 : vector<16x96xf32>
    %276 = arith.divf %274, %275 : vector<16x96xf32>
    %277 = vector.extract_strided_slice %276 {offsets = [0, 0], sizes = [16, 32], strides = [1, 1]} : vector<16x96xf32> to vector<16x32xf32>
    %278 = vector.extract_strided_slice %276 {offsets = [0, 32], sizes = [16, 32], strides = [1, 1]} : vector<16x96xf32> to vector<16x32xf32>
    %279 = vector.extract_strided_slice %276 {offsets = [0, 64], sizes = [16, 32], strides = [1, 1]} : vector<16x96xf32> to vector<16x32xf32>
    %280 = vector.extract_strided_slice %270 {offsets = [0, 96], sizes = [16, 32], strides = [1, 1]} : vector<16x128xf32> to vector<16x32xf32>
    %281 = math.tanh %280 : vector<16x32xf32>
    %282 = arith.mulf %278, %264 : vector<16x32xf32>
    %283 = arith.mulf %277, %281 : vector<16x32xf32>
    %284 = arith.addf %282, %283 : vector<16x32xf32>
    %285 = math.tanh %284 : vector<16x32xf32>
    %286 = arith.mulf %279, %285 : vector<16x32xf32>
    %287 = arith.maximumf %267, %286 : vector<16x32xf32>
    %288 = vector.extract_strided_slice %184 {offsets = [80, 0], sizes = [16, 128], strides = [1, 1]} : vector<128x128xf32> to vector<16x128xf32>
    %cst_56 = arith.constant dense<0.000000e+00> : vector<16x128xf32>
    %289 = tpu.matmul %286, %180, %cst_56 {dimension_numbers = #tpu.dot_dimension_numbers<[1], [0], [0], [1], [0, 0, 1, 1], [], []>} : vector<16x32xf32>, vector<32x128xf32>, vector<16x128xf32> -> vector<16x128xf32>
    %290 = arith.addf %288, %289 : vector<16x128xf32>
    %291 = vector.extract_strided_slice %290 {offsets = [0, 0], sizes = [16, 96], strides = [1, 1]} : vector<16x128xf32> to vector<16x96xf32>
    %292 = arith.negf %291 : vector<16x96xf32>
    %293 = math.exp %292 : vector<16x96xf32>
    %cst_57 = arith.constant 1.000000e+00 : f32
    %294 = vector.broadcast %cst_57 : f32 to vector<16x96xf32>
    %295 = arith.addf %294, %293 : vector<16x96xf32>
    %296 = arith.divf %294, %295 : vector<16x96xf32>
    %297 = vector.extract_strided_slice %296 {offsets = [0, 0], sizes = [16, 32], strides = [1, 1]} : vector<16x96xf32> to vector<16x32xf32>
    %298 = vector.extract_strided_slice %296 {offsets = [0, 32], sizes = [16, 32], strides = [1, 1]} : vector<16x96xf32> to vector<16x32xf32>
    %299 = vector.extract_strided_slice %296 {offsets = [0, 64], sizes = [16, 32], strides = [1, 1]} : vector<16x96xf32> to vector<16x32xf32>
    %300 = vector.extract_strided_slice %290 {offsets = [0, 96], sizes = [16, 32], strides = [1, 1]} : vector<16x128xf32> to vector<16x32xf32>
    %301 = math.tanh %300 : vector<16x32xf32>
    %302 = arith.mulf %298, %284 : vector<16x32xf32>
    %303 = arith.mulf %297, %301 : vector<16x32xf32>
    %304 = arith.addf %302, %303 : vector<16x32xf32>
    %305 = math.tanh %304 : vector<16x32xf32>
    %306 = arith.mulf %299, %305 : vector<16x32xf32>
    %307 = arith.maximumf %287, %306 : vector<16x32xf32>
    %308 = vector.extract_strided_slice %184 {offsets = [96, 0], sizes = [16, 128], strides = [1, 1]} : vector<128x128xf32> to vector<16x128xf32>
    %cst_58 = arith.constant dense<0.000000e+00> : vector<16x128xf32>
    %309 = tpu.matmul %306, %180, %cst_58 {dimension_numbers = #tpu.dot_dimension_numbers<[1], [0], [0], [1], [0, 0, 1, 1], [], []>} : vector<16x32xf32>, vector<32x128xf32>, vector<16x128xf32> -> vector<16x128xf32>
    %310 = arith.addf %308, %309 : vector<16x128xf32>
    %311 = vector.extract_strided_slice %310 {offsets = [0, 0], sizes = [16, 96], strides = [1, 1]} : vector<16x128xf32> to vector<16x96xf32>
    %312 = arith.negf %311 : vector<16x96xf32>
    %313 = math.exp %312 : vector<16x96xf32>
    %cst_59 = arith.constant 1.000000e+00 : f32
    %314 = vector.broadcast %cst_59 : f32 to vector<16x96xf32>
    %315 = arith.addf %314, %313 : vector<16x96xf32>
    %316 = arith.divf %314, %315 : vector<16x96xf32>
    %317 = vector.extract_strided_slice %316 {offsets = [0, 0], sizes = [16, 32], strides = [1, 1]} : vector<16x96xf32> to vector<16x32xf32>
    %318 = vector.extract_strided_slice %316 {offsets = [0, 32], sizes = [16, 32], strides = [1, 1]} : vector<16x96xf32> to vector<16x32xf32>
    %319 = vector.extract_strided_slice %316 {offsets = [0, 64], sizes = [16, 32], strides = [1, 1]} : vector<16x96xf32> to vector<16x32xf32>
    %320 = vector.extract_strided_slice %310 {offsets = [0, 96], sizes = [16, 32], strides = [1, 1]} : vector<16x128xf32> to vector<16x32xf32>
    %321 = math.tanh %320 : vector<16x32xf32>
    %322 = arith.mulf %318, %304 : vector<16x32xf32>
    %323 = arith.mulf %317, %321 : vector<16x32xf32>
    %324 = arith.addf %322, %323 : vector<16x32xf32>
    %325 = math.tanh %324 : vector<16x32xf32>
    %326 = arith.mulf %319, %325 : vector<16x32xf32>
    %327 = arith.maximumf %307, %326 : vector<16x32xf32>
    %328 = vector.extract_strided_slice %184 {offsets = [112, 0], sizes = [16, 128], strides = [1, 1]} : vector<128x128xf32> to vector<16x128xf32>
    %cst_60 = arith.constant dense<0.000000e+00> : vector<16x128xf32>
    %329 = tpu.matmul %326, %180, %cst_60 {dimension_numbers = #tpu.dot_dimension_numbers<[1], [0], [0], [1], [0, 0, 1, 1], [], []>} : vector<16x32xf32>, vector<32x128xf32>, vector<16x128xf32> -> vector<16x128xf32>
    %330 = arith.addf %328, %329 : vector<16x128xf32>
    %331 = vector.extract_strided_slice %330 {offsets = [0, 0], sizes = [16, 96], strides = [1, 1]} : vector<16x128xf32> to vector<16x96xf32>
    %332 = arith.negf %331 : vector<16x96xf32>
    %333 = math.exp %332 : vector<16x96xf32>
    %cst_61 = arith.constant 1.000000e+00 : f32
    %334 = vector.broadcast %cst_61 : f32 to vector<16x96xf32>
    %335 = arith.addf %334, %333 : vector<16x96xf32>
    %336 = arith.divf %334, %335 : vector<16x96xf32>
    %337 = vector.extract_strided_slice %336 {offsets = [0, 0], sizes = [16, 32], strides = [1, 1]} : vector<16x96xf32> to vector<16x32xf32>
    %338 = vector.extract_strided_slice %336 {offsets = [0, 32], sizes = [16, 32], strides = [1, 1]} : vector<16x96xf32> to vector<16x32xf32>
    %339 = vector.extract_strided_slice %336 {offsets = [0, 64], sizes = [16, 32], strides = [1, 1]} : vector<16x96xf32> to vector<16x32xf32>
    %340 = vector.extract_strided_slice %330 {offsets = [0, 96], sizes = [16, 32], strides = [1, 1]} : vector<16x128xf32> to vector<16x32xf32>
    %341 = math.tanh %340 : vector<16x32xf32>
    %342 = arith.mulf %338, %324 : vector<16x32xf32>
    %343 = arith.mulf %337, %341 : vector<16x32xf32>
    %344 = arith.addf %342, %343 : vector<16x32xf32>
    %345 = math.tanh %344 : vector<16x32xf32>
    %346 = arith.mulf %339, %345 : vector<16x32xf32>
    %347 = arith.maximumf %327, %346 : vector<16x32xf32>
    %348 = arith.truncf %347 : vector<16x32xf32> to vector<16x32xbf16>
    %c0_62 = arith.constant 0 : index
    %c0_63 = arith.constant 0 : index
    %349 = vector.load %arg7[%c0_62, %c0_63] : memref<32x128xbf16, #tpu.memory_space<vmem>>, vector<32x128xbf16>
    %cst_64 = arith.constant dense<0.000000e+00> : vector<16x128xf32>
    %350 = tpu.matmul %348, %349, %cst_64 {dimension_numbers = #tpu.dot_dimension_numbers<[1], [0], [0], [1], [0, 0, 1, 1], [], []>} : vector<16x32xbf16>, vector<32x128xbf16>, vector<16x128xf32> -> vector<16x128xf32>
    %c0_65 = arith.constant 0 : index
    %c0_66 = arith.constant 0 : index
    %351 = vector.load %arg8[%c0_65, %c0_66] : memref<1x128xf32, #tpu.memory_space<vmem>>, vector<1x128xf32>
    %352 = vector.broadcast %351 : vector<1x128xf32> to vector<16x128xf32>
    %353 = arith.addf %350, %352 : vector<16x128xf32>
    %c0_67 = arith.constant 0 : index
    %c0_68 = arith.constant 0 : index
    %354 = vector.load %arg9[%c0_67, %c0_68] : memref<16x128xf32, #tpu.memory_space<vmem>>, vector<16x128xf32>
    tpu.vector_store %arg9[%c0_67, %c0_68], %353 {strides = array<i32>} : memref<16x128xf32, #tpu.memory_space<vmem>>, vector<16x128xf32>,
    return
  }
}

</mosaic_0001>

<bundles_post_ra>
// kernel: lstm_encoder_forward.1
= control target key start
LH: loop header
LB: loop body
LE: loop exit
PB: predicated region body
PF: predicated region fallthrough
CT: control target
= control target key end

     0   :  { %vm73_vm0 = vcmask 130048   ;;  %v2597_v8 = vmov 0.0   ;;  %s2598_s23 = smov 32   ;;  %s2599_s28 = smov 64   ;;  %vm147_vm9 = vcmask 261120   ;;  %s3373_s2 = inlined_call_operand.vmem [shape: f32[32,128], index: 2, kind: input, shape index: {}]   ;;  %s3374_s1 = inlined_call_operand.vmem [shape: bf16[16,128], index: 1, kind: input, shape index: {}]   ;;  %s3375_s0 = inlined_call_operand.vmem [shape: f32[128,16], index: 0, kind: input, shape index: {}]   ;;  %s3376_s3 = inlined_call_operand.vmem [shape: f32[1,128], index: 3, kind: input, shape index: {}]   ;;  %s3377_s4 = inlined_call_operand.vmem [shape: bf16[32,128], index: 4, kind: input, shape index: {}]   ;;  %s3378_s6 = inlined_call_operand.vmem [shape: f32[1,128], index: 6, kind: input, shape index: {}]   ;;  %s3379_s5 = inlined_call_operand.vmem [shape: f32[32,128], index: 5, kind: input, shape index: {}]   ;;  %s3380_s8 = inlined_call_operand.vmem [shape: f32[1,128], index: 8, kind: input, shape index: {}]   ;;  %s3381_s7 = inlined_call_operand.vmem [shape: bf16[32,128], index: 7, kind: input, shape index: {}]   ;;  %s3382_s9 = inlined_call_operand.vmem [shape: f32[16,128], index: 9, kind: output, shape index: {}]  }
   0x1   :  { %v2653_v0 = vld [vmem:[%s3373_s2 + $0x18] sm:$0xff]  ;;  %v2315_v1 = vld [vmem:[%s3374_s1] sm:$0xff]  ;;  %v2661_v2 = vld [vmem:[%s3373_s2 + $0x10] sm:$0xff] }
   0x2   :  { %163 = vmatpush.msra.mxu1 %v2653_v0  ;;  %v33_v3 = vld [vmem:[%s3375_s0] sm:$0xff]  ;;  %v34_v4 = vld [vmem:[%s3375_s0 + $0x8] sm:$0xff]  ;;  %285 = vmatpush.msra.mxu2 %v2653_v0  ;;  %v35_v58 = vld [vmem:[%s3375_s0 + $0x10] sm:$0xff] }
   0x3   :  { %105 = vmatpush.bf16.msra.mxu0 %v2315_v1  ;;  %v2674_v5 = vld [vmem:[%s3373_s2 + $0x8] sm:$0xff]  ;;  %v49_v6 = vpack.c.bf16 %v34_v4, %v33_v3  ;;  %2328 = vmatpush.msra.mxu3 %v2653_v0  ;;  %v2682_v7 = vld [vmem:[%s3373_s2] sm:$0xff]  ;;  %v36_v59 = vld [vmem:[%s3375_s0 + $0x18] sm:$0xff] }
   0x4   :  { %164 = vmatpush.msra.mxu1 %v2661_v2  ;;  %286 = vmatpush.msra.mxu2 %v2661_v2  ;;  %v2713_v9 = vld [vmem:[%s3376_s3] ss:$0 sm:$0xff]  ;;  %v50_v60 = vpack.c.bf16 %v36_v59, %v35_v58  ;;  %v38_v59 = vld [vmem:[%s3375_s0 + $0x28] sm:$0xff] }
   0x5   :  { %2329 = vmatpush.msra.mxu3 %v2661_v2 }
   0x6   :  { %165 = vmatpush.msra.mxu1 %v2674_v5  ;;  %2190 = vmatmul.msk.bf16.vlgmr.msra.gmra.mxu0 %vm73_vm0, %v49_v6 }
   0x7   :  { %769 = vmatpush.msrb.mxu0 %v2653_v0  ;;  %287 = vmatpush.msra.mxu2 %v2674_v5 }
   0x8   :  { %166 = vmatpush.msra.mxu1 %v2682_v7  ;;  %2330 = vmatpush.msra.mxu3 %v2674_v5 }
   0x9   :  { %770 = vmatpush.msrb.mxu0 %v2661_v2  ;;  %167 = vmatmul.f32.vlgmr.msra.gmra.mxu1 %v2597_v8 }
   0xa   :  { %288 = vmatpush.msra.mxu2 %v2682_v7  ;;  %527 = vmatpush.msrb.mxu1 %v2653_v0 }
   0xb   :  { %771 = vmatpush.msrb.mxu0 %v2674_v5  ;;  %2331 = vmatpush.msra.mxu3 %v2682_v7 }
   0xc   :  { %406 = vmatpush.msrb.mxu2 %v2653_v0  ;;  %528 = vmatpush.msrb.mxu1 %v2661_v2 }
   0xd   :  { %772 = vmatpush.msrb.mxu0 %v2682_v7 }
   0xe   :  { %407 = vmatpush.msrb.mxu2 %v2661_v2  ;;  %529 = vmatpush.msrb.mxu1 %v2674_v5 }
  0x10   :  { %408 = vmatpush.msrb.mxu2 %v2674_v5  ;;  %530 = vmatpush.msrb.mxu1 %v2682_v7 }
  0x11   :  { %170 = vmatmul.f32.gmra.mxu1 %v2597_v8 }
  0x12   :  { %409 = vmatpush.msrb.mxu2 %v2682_v7  ;;  %890 = vmatpush.msra.mxu1 %v2653_v0 }
  0x14   :  { %891 = vmatpush.msra.mxu1 %v2661_v2 }
  0x16   :  { %892 = vmatpush.msra.mxu1 %v2674_v5  ;;  %2191 = vmatmul.msk.bf16.gmra.mxu0 %vm73_vm0, %v50_v60 }
  0x18   :  { %893 = vmatpush.msra.mxu1 %v2682_v7 }
  0x83   :  { %v107_v10 = vpop.f32.mrf.mxu0 }
  0x84   :  { %v108_v11 = vadd.f32 %v2713_v9, %v107_v10 }
  0x86   :  { %v168_v12 = vpop.f32.mrf.mxu1 }
  0x87   :  { %v174_v13 = vadd.f32 %v168_v12, %v108_v11 }
  0x89   :  { %2338 = vtanh.f32 %v174_v13  ;;  %v2198_v20 = vmul.f32 -1.442695, %v174_v13 }
  0x8b   :  { %v109_v14 = vpop.f32.mrf.mxu0 }
  0x8c   :  { %v110_v15 = vadd.f32 %v2713_v9, %v109_v14 }
  0x8e   :  { %v171_v16 = vpop.f32.mrf.mxu1 }
  0x8f   :  { %v2339_v17 = vpop.eup %2338  ;;  %v175_v18 = vadd.f32 %v171_v16, %v110_v15 }
  0x90   :  { %220 = vrot.lane.b32.xlu0 %v2339_v17, %s2598_s23 }
  0x91   :  { %2340 = vtanh.f32 %v175_v18  ;;  %v2199_v21 = vmul.f32 -1.442695, %v175_v18 }
  0x92   :  { %2342 = vpow2.f32 %v2198_v20 }
  0x93   :  { %2344 = vpow2.f32 %v2199_v21  ;;  %v112_v6 = vpop.f32.mrf.mxu0 }
  0x94   :  { %v113_v10 = vadd.f32 %v2713_v9, %v112_v6 }
  0x97   :  { %v2341_v19 = vpop.eup %2340 }
  0x98   :  { %222 = vrot.lane.b32.xlu0 %v2341_v19, %s2598_s23  ;;  %v2343_v22 = vpop.eup %2342 }
  0x99   :  { %v182_v23 = vadd.f32 1.0, %v2343_v22  ;;  %v2345_v24 = vpop.eup %2344 }
  0x9a   :  { %v183_v25 = vadd.f32 1.0, %v2345_v24 }
  0x9b   :  { %2346 = vrcp.f32 %v182_v23  ;;  %v195_v34 = vand.u32 2147483648, %v182_v23  ;;  %vm189_vm2 = vweird.f32 %v182_v23  ;;  %v193_v35 = vand.u32 2147483647, %v182_v23  ;;  %v114_v13 = vpop.f32.mrf.mxu0 }
  0x9c   :  { %2348 = vrcp.f32 %v183_v25  ;;  %v210_v43 = vand.u32 2147483648, %v183_v25  ;;  %vm204_vm6 = vweird.f32 %v183_v25  ;;  %v208_v44 = vand.u32 2147483647, %v183_v25 }
  0x9d   :  { %v196_v38 = vor.u32 1.1754944e-38, %v195_v34  ;;  %vm194_vm4 = vcmp.eq.f32.partialorder %v193_v35, 8.507059e+37  ;;  %v115_v14 = vadd.f32 %v2713_v9, %v114_v13 }
  0x9e   :  { %v211_v46 = vor.u32 1.1754944e-38, %v210_v43  ;;  %vm209_vm8 = vcmp.eq.f32.partialorder %v208_v44, 8.507059e+37 }
  0xa1   :  { %v2347_v26 = vpop.eup %2346 }
  0xa2   :  { %v185_v27 = vmul.f32 %v2347_v26, %v182_v23  ;;  %v2349_v29 = vpop.eup %2348  ;;  %vm190_vm1 = vweird.f32 %v2347_v26 }
  0xa3   :  { %v200_v31 = vmul.f32 %v2349_v29, %v183_v25  ;;  %vm191_vm3 = vmor %vm189_vm2, %vm190_vm1  ;;  %vm205_vm5 = vweird.f32 %v2349_v29 }
  0xa4   :  { %v186_v28 = vsub.f32 1.0, %v185_v27  ;;  %vm206_vm7 = vmor %vm204_vm6, %vm205_vm5 }
  0xa5   :  { %v201_v33 = vsub.f32 1.0, %v200_v31 }
  0xa6   :  { %v187_v30 = vmul.f32 %v2347_v26, %v186_v28 }
  0xa7   :  { %v202_v37 = vmul.f32 %v2349_v29, %v201_v33 }
  0xa8   :  { %v188_v32 = vadd.f32 %v2347_v26, %v187_v30 }
  0xa9   :  { %v203_v42 = vadd.f32 %v2349_v29, %v202_v37 }
  0xaa   :  { %v192_v36 = vsel %vm191_vm3, %v2347_v26, %v188_v32 }
  0xab   :  { %v197_v40 = vsel %vm194_vm4, %v196_v38, %v192_v36  ;;  %v207_v45 = vsel %vm206_vm7, %v2349_v29, %v203_v42 }
  0xac   :  { %v212_v47 = vsel %vm209_vm8, %v211_v46, %v207_v45  ;;  %v216_v50 = vmul.f32 0.0, %v197_v40 }
  0xad   :  { %v217_v53 = vmul.f32 0.0, %v212_v47 }
 0x102   :  { %v221_v39 = vpop.permute.xlu0 %220 }
 0x103   :  { %v226_v41 = vmul.f32 %v221_v39, %v197_v40 }
 0x105   :  { %230 = vrot.lane.b32.xlu1 %v226_v41, %s2598_s23 }
 0x10a   :  { %v223_v48 = vpop.permute.xlu0 %222 }
 0x10b   :  { %v227_v49 = vmul.f32 %v223_v48, %v212_v47 }
 0x10d   :  { %232 = vrot.lane.b32.xlu1 %v227_v49, %s2598_s23 }
 0x177   :  { %v231_v51 = vpop.permute.xlu1 %230 }
 0x178   :  { %v2721_v52 = vadd.f32 %v231_v51, %v216_v50 }
 0x17a   :  { %2350 = vtanh.f32 %v2721_v52 }
 0x17f   :  { %v233_v54 = vpop.permute.xlu1 %232 }
 0x180   :  { %v2351_v55 = vpop.eup %2350  ;;  %v2724_v56 = vadd.f32 %v233_v54, %v217_v53 }
 0x181   :  { %242 = vrot.lane.b32.xlu2 %v2351_v55, %s2598_s23 }
 0x182   :  { %2352 = vtanh.f32 %v2724_v56 }
 0x188   :  { %v2353_v57 = vpop.eup %2352 }
 0x189   :  { %244 = vrot.lane.b32.xlu2 %v2353_v57, %s2598_s23 }
 0x1db   :  { %v243_v61 = vpop.permute.xlu2 %242 }
 0x1dc   :  { %v2736_v62 = vmul.f32 %v243_v61, %v197_v40 }
 0x1de   :  { %265 = vrot.lane.b32.xlu0 %v2736_v62, %s2599_s28 }
 0x1e3   :  { %v245_v63 = vpop.permute.xlu2 %244 }
 0x1e4   :  { %v2740_v1 = vmul.f32 %v245_v63, %v212_v47 }
 0x1e6   :  { %267 = vrot.lane.b32.xlu1 %v2740_v1, %s2599_s28 }
 0x250   :  { %v266_v3 = vpop.permute.xlu0 %265 }
 0x251   :  { %2200 = vmatmul.msk.f32.vlgmr.msra.gmra.mxu2 %vm147_vm9, %v266_v3 }
 0x252   :  { %648 = vmatpush.msra.mxu2 %v2653_v0 }
 0x254   :  { %649 = vmatpush.msra.mxu2 %v2661_v2 }
 0x256   :  { %650 = vmatpush.msra.mxu2 %v2674_v5 }
 0x258   :  { %v268_v4 = vpop.permute.xlu1 %267  ;;  %651 = vmatpush.msra.mxu2 %v2682_v7 }
 0x259   :  { %2201 = vmatmul.msk.f32.gmra.mxu2 %vm147_vm9, %v268_v4 }
 0x2d4   :  { %v290_v11 = vpop.f32.mrf.mxu2 }
 0x2d5   :  { %v296_v12 = vadd.f32 %v290_v11, %v113_v10 }
 0x2d7   :  { %2354 = vtanh.f32 %v296_v12  ;;  %v2202_v19 = vmul.f32 -1.442695, %v296_v12 }
 0x2dc   :  { %v293_v15 = vpop.f32.mrf.mxu2 }
 0x2dd   :  { %v2355_v16 = vpop.eup %2354  ;;  %v297_v17 = vadd.f32 %v293_v15, %v115_v14 }
 0x2de   :  { %342 = vrot.lane.b32.xlu2 %v2355_v16, %s2598_s23 }
 0x2df   :  { %2356 = vtanh.f32 %v297_v17  ;;  %v2203_v25 = vmul.f32 -1.442695, %v297_v17 }
 0x2e0   :  { %2358 = vpow2.f32 %v2202_v19 }
 0x2e5   :  { %v2357_v18 = vpop.eup %2356 }
 0x2e6   :  { %344 = vrot.lane.b32.xlu0 %v2357_v18, %s2598_s23  ;;  %v2359_v20 = vpop.eup %2358 }
 0x2e7   :  { %v304_v21 = vadd.f32 1.0, %v2359_v20 }
 0x2e9   :  { %2360 = vrcp.f32 %v304_v21  ;;  %v317_v28 = vand.u32 2147483648, %v304_v21  ;;  %vm311_vm11 = vweird.f32 %v304_v21  ;;  %v315_v29 = vand.u32 2147483647, %v304_v21 }
 0x2ea   :  { %2362 = vpow2.f32 %v2203_v25 }
 0x2eb   :  { %v318_v32 = vor.u32 1.1754944e-38, %v317_v28  ;;  %vm316_vm13 = vcmp.eq.f32.partialorder %v315_v29, 8.507059e+37 }
 0x2ef   :  { %v2361_v22 = vpop.eup %2360 }
 0x2f0   :  { %v307_v23 = vmul.f32 %v2361_v22, %v304_v21  ;;  %vm312_vm10 = vweird.f32 %v2361_v22  ;;  %v2363_v30 = vpop.eup %2362 }
 0x2f1   :  { %vm313_vm12 = vmor %vm311_vm11, %vm312_vm10  ;;  %v305_v33 = vadd.f32 1.0, %v2363_v30 }
 0x2f2   :  { %v308_v24 = vsub.f32 1.0, %v307_v23 }
 0x2f3   :  { %2364 = vrcp.f32 %v305_v33  ;;  %v332_v42 = vand.u32 2147483648, %v305_v33  ;;  %vm326_vm15 = vweird.f32 %v305_v33  ;;  %v330_v43 = vand.u32 2147483647, %v305_v33 }
 0x2f4   :  { %v309_v26 = vmul.f32 %v2361_v22, %v308_v24 }
 0x2f5   :  { %v333_v45 = vor.u32 1.1754944e-38, %v332_v42  ;;  %vm331_vm2 = vcmp.eq.f32.partialorder %v330_v43, 8.507059e+37 }
 0x2f6   :  { %v310_v27 = vadd.f32 %v2361_v22, %v309_v26 }
 0x2f8   :  { %v314_v31 = vsel %vm313_vm12, %v2361_v22, %v310_v27 }
 0x2f9   :  { %v319_v34 = vsel %vm316_vm13, %v318_v32, %v314_v31  ;;  %v2365_v37 = vpop.eup %2364 }
 0x2fa   :  { %v322_v38 = vmul.f32 %v2365_v37, %v305_v33  ;;  %vm327_vm14 = vweird.f32 %v2365_v37  ;;  %v338_v49 = vmul.f32 %v319_v34, %v2721_v52  ;;  %v37_v52 = vld [vmem:[%s3375_s0 + $0x20] sm:$0xff] }
 0x2fb   :  { %vm328_vm1 = vmor %vm326_vm15, %vm327_vm14 }
 0x2fc   :  { %v323_v39 = vsub.f32 1.0, %v322_v38 }
 0x2fe   :  { %v324_v40 = vmul.f32 %v2365_v37, %v323_v39 }
 0x300   :  { %v325_v41 = vadd.f32 %v2365_v37, %v324_v40 }
 0x302   :  { %v329_v44 = vsel %vm328_vm1, %v2365_v37, %v325_v41 }
 0x303   :  { %v334_v47 = vsel %vm331_vm2, %v333_v45, %v329_v44 }
 0x304   :  { %v339_v53 = vmul.f32 %v334_v47, %v2724_v56  ;;  %v51_v56 = vpack.c.bf16 %v38_v59, %v37_v52  ;;  %v40_v52 = vld [vmem:[%s3375_s0 + $0x38] sm:$0xff] }
 0x306   :  { %2192 = vmatmul.msk.bf16.gmra.mxu0 %vm73_vm0, %v51_v56 }
 0x338   :  { %v343_v35 = vpop.permute.xlu2 %342 }
 0x339   :  { %v348_v36 = vmul.f32 %v343_v35, %v319_v34 }
 0x33b   :  { %352 = vrot.lane.b32.xlu1 %v348_v36, %s2598_s23 }
 0x358   :  { %v345_v46 = vpop.permute.xlu0 %344 }
 0x359   :  { %v349_v48 = vmul.f32 %v345_v46, %v334_v47 }
 0x35b   :  { %354 = vrot.lane.b32.xlu2 %v349_v48, %s2598_s23 }
 0x383   :  { %v117_v10 = vpop.f32.mrf.mxu0 }
 0x384   :  { %v118_v11 = vadd.f32 %v2713_v9, %v117_v10 }
 0x38b   :  { %v119_v15 = vpop.f32.mrf.mxu0 }
 0x3ad   :  { %v353_v50 = vpop.permute.xlu1 %352 }
 0x3ae   :  { %v2757_v51 = vadd.f32 %v353_v50, %v338_v49 }
 0x3b0   :  { %2366 = vtanh.f32 %v2757_v51 }
 0x3b5   :  { %v355_v54 = vpop.permute.xlu2 %354 }
 0x3b6   :  { %v2367_v55 = vpop.eup %2366  ;;  %v2761_v57 = vadd.f32 %v355_v54, %v339_v53 }
 0x3b7   :  { %364 = vrot.lane.b32.xlu0 %v2367_v55, %s2598_s23 }
 0x3b8   :  { %2368 = vtanh.f32 %v2761_v57 }
 0x3be   :  { %v2369_v58 = vpop.eup %2368 }
 0x3bf   :  { %366 = vrot.lane.b32.xlu1 %v2369_v58, %s2598_s23 }
 0x429   :  { %v365_v60 = vpop.permute.xlu0 %364 }
 0x42a   :  { %v2773_v61 = vmul.f32 %v365_v60, %v319_v34 }
 0x42c   :  { %386 = vrot.lane.b32.xlu2 %v2773_v61, %s2599_s28 }
 0x431   :  { %v367_v63 = vpop.permute.xlu1 %366 }
 0x432   :  { %v2777_v3 = vmul.f32 %v367_v63, %v334_v47 }
 0x434   :  { %388 = vrot.lane.b32.xlu0 %v2777_v3, %s2599_s28 }
 0x486   :  { %v387_v4 = vpop.permute.xlu2 %386 }
 0x487   :  { %2204 = vmatmul.msk.f32.vlgmr.msrb.gmra.mxu2 %vm147_vm9, %v387_v4 }
 0x488   :  { %1011 = vmatpush.msrb.mxu2 %v2653_v0  ;;  %v120_v0 = vadd.f32 %v2713_v9, %v119_v15 }
 0x48a   :  { %1012 = vmatpush.msrb.mxu2 %v2661_v2 }
 0x48c   :  { %1013 = vmatpush.msrb.mxu2 %v2674_v5 }
 0x48e   :  { %1014 = vmatpush.msrb.mxu2 %v2682_v7 }
 0x4a6   :  { %v389_v6 = vpop.permute.xlu0 %388 }
 0x4a7   :  { %2205 = vmatmul.msk.f32.gmra.mxu2 %vm147_vm9, %v389_v6 }
 0x50a   :  { %v411_v12 = vpop.f32.mrf.mxu2 }
 0x50b   :  { %v417_v13 = vadd.f32 %v411_v12, %v118_v11 }
 0x50d   :  { %2370 = vtanh.f32 %v417_v13  ;;  %v2206_v7 = vmul.f32 -1.442695, %v417_v13 }
 0x513   :  { %v2371_v14 = vpop.eup %2370 }
 0x514   :  { %463 = vrot.lane.b32.xlu1 %v2371_v14, %s2598_s23 }
 0x52a   :  { %v414_v2 = vpop.f32.mrf.mxu2 }
 0x52b   :  { %v418_v16 = vadd.f32 %v414_v2, %v120_v0 }
 0x52d   :  { %2372 = vtanh.f32 %v418_v16  ;;  %v2207_v17 = vmul.f32 -1.442695, %v418_v16 }
 0x52e   :  { %2374 = vpow2.f32 %v2206_v7 }
 0x52f   :  { %2376 = vpow2.f32 %v2207_v17 }
 0x533   :  { %v2373_v5 = vpop.eup %2372 }
 0x534   :  { %465 = vrot.lane.b32.xlu2 %v2373_v5, %s2598_s23  ;;  %v2375_v18 = vpop.eup %2374 }
 0x535   :  { %v425_v19 = vadd.f32 1.0, %v2375_v18  ;;  %v2377_v20 = vpop.eup %2376 }
 0x536   :  { %v426_v21 = vadd.f32 1.0, %v2377_v20 }
 0x537   :  { %2378 = vrcp.f32 %v425_v19  ;;  %v438_v30 = vand.u32 2147483648, %v425_v19  ;;  %vm432_vm4 = vweird.f32 %v425_v19  ;;  %v436_v31 = vand.u32 2147483647, %v425_v19 }
 0x538   :  { %2380 = vrcp.f32 %v426_v21  ;;  %v453_v39 = vand.u32 2147483648, %v426_v21  ;;  %vm447_vm8 = vweird.f32 %v426_v21  ;;  %v451_v40 = vand.u32 2147483647, %v426_v21 }
 0x539   :  { %v439_v34 = vor.u32 1.1754944e-38, %v438_v30  ;;  %vm437_vm6 = vcmp.eq.f32.partialorder %v436_v31, 8.507059e+37 }
 0x53a   :  { %v454_v42 = vor.u32 1.1754944e-38, %v453_v39  ;;  %vm452_vm11 = vcmp.eq.f32.partialorder %v451_v40, 8.507059e+37 }
 0x53d   :  { %v2379_v22 = vpop.eup %2378 }
 0x53e   :  { %v428_v23 = vmul.f32 %v2379_v22, %v425_v19  ;;  %v2381_v25 = vpop.eup %2380  ;;  %vm433_vm3 = vweird.f32 %v2379_v22 }
 0x53f   :  { %v443_v27 = vmul.f32 %v2381_v25, %v426_v21  ;;  %vm434_vm5 = vmor %vm432_vm4, %vm433_vm3  ;;  %vm448_vm7 = vweird.f32 %v2381_v25 }
 0x540   :  { %v429_v24 = vsub.f32 1.0, %v428_v23  ;;  %vm449_vm10 = vmor %vm447_vm8, %vm448_vm7 }
 0x541   :  { %v444_v29 = vsub.f32 1.0, %v443_v27 }
 0x542   :  { %v430_v26 = vmul.f32 %v2379_v22, %v429_v24 }
 0x543   :  { %v445_v33 = vmul.f32 %v2381_v25, %v444_v29 }
 0x544   :  { %v431_v28 = vadd.f32 %v2379_v22, %v430_v26 }
 0x545   :  { %v446_v38 = vadd.f32 %v2381_v25, %v445_v33 }
 0x546   :  { %v435_v32 = vsel %vm434_vm5, %v2379_v22, %v431_v28 }
 0x547   :  { %v440_v36 = vsel %vm437_vm6, %v439_v34, %v435_v32  ;;  %v450_v41 = vsel %vm449_vm10, %v2381_v25, %v446_v38 }
 0x548   :  { %v455_v44 = vsel %vm452_vm11, %v454_v42, %v450_v41  ;;  %v459_v46 = vmul.f32 %v440_v36, %v2757_v51 }
 0x549   :  { %v460_v49 = vmul.f32 %v455_v44, %v2761_v57  ;;  %v39_v57 = vld [vmem:[%s3375_s0 + $0x30] sm:$0xff] }
 0x54a   :  { %v52_v59 = vpack.c.bf16 %v40_v52, %v39_v57  ;;  %v42_v57 = vld [vmem:[%s3375_s0 + $0x48] sm:$0xff] }
 0x54c   :  { %2193 = vmatmul.msk.bf16.gmra.mxu0 %vm73_vm0, %v52_v59 }
 0x586   :  { %v464_v35 = vpop.permute.xlu1 %463 }
 0x587   :  { %v469_v37 = vmul.f32 %v464_v35, %v440_v36 }
 0x589   :  { %473 = vrot.lane.b32.xlu0 %v469_v37, %s2598_s23 }
 0x58e   :  { %v466_v43 = vpop.permute.xlu2 %465 }
 0x58f   :  { %v470_v45 = vmul.f32 %v466_v43, %v455_v44 }
 0x591   :  { %475 = vrot.lane.b32.xlu1 %v470_v45, %s2598_s23 }
 0x5c9   :  { %v122_v6 = vpop.f32.mrf.mxu0 }
 0x5ca   :  { %v123_v10 = vadd.f32 %v2713_v9, %v122_v6 }
 0x5d1   :  { %v124_v13 = vpop.f32.mrf.mxu0 }
 0x5d2   :  { %v125_v14 = vadd.f32 %v2713_v9, %v124_v13 }
 0x5fb   :  { %v474_v47 = vpop.permute.xlu0 %473 }
 0x5fc   :  { %v2794_v48 = vadd.f32 %v474_v47, %v459_v46 }
 0x5fe   :  { %2382 = vtanh.f32 %v2794_v48 }
 0x603   :  { %v476_v50 = vpop.permute.xlu1 %475 }
 0x604   :  { %v2383_v53 = vpop.eup %2382  ;;  %v2798_v54 = vadd.f32 %v476_v50, %v460_v49 }
 0x605   :  { %485 = vrot.lane.b32.xlu2 %v2383_v53, %s2598_s23 }
 0x606   :  { %2384 = vtanh.f32 %v2798_v54 }
 0x60c   :  { %v2385_v55 = vpop.eup %2384 }
 0x60d   :  { %487 = vrot.lane.b32.xlu0 %v2385_v55, %s2598_s23 }
 0x65f   :  { %v486_v58 = vpop.permute.xlu2 %485 }
 0x660   :  { %v2803_v51 = vmul.f32 %v486_v58, %v440_v36 }
 0x662   :  { %507 = vrot.lane.b32.xlu1 %v2803_v51, %s2599_s28 }
 0x67f   :  { %v488_v56 = vpop.permute.xlu0 %487 }
 0x680   :  { %v2814_v60 = vmul.f32 %v488_v56, %v455_v44 }
 0x682   :  { %509 = vrot.lane.b32.xlu2 %v2814_v60, %s2599_s28 }
 0x6d4   :  { %v508_v63 = vpop.permute.xlu1 %507 }
 0x6d5   :  { %2208 = vmatmul.msk.f32.vlgmr.msrb.gmra.mxu1 %vm147_vm9, %v508_v63 }
 0x6dc   :  { %v510_v4 = vpop.permute.xlu2 %509 }
 0x6dd   :  { %2209 = vmatmul.msk.f32.gmra.mxu1 %vm147_vm9, %v510_v4 }
 0x752   :  { %v532_v11 = vpop.f32.mrf.mxu1 }
 0x753   :  { %v538_v12 = vadd.f32 %v532_v11, %v123_v10 }
 0x755   :  { %2386 = vtanh.f32 %v538_v12  ;;  %v2210_v5 = vmul.f32 -1.442695, %v538_v12 }
 0x75a   :  { %v535_v15 = vpop.f32.mrf.mxu1 }
 0x75b   :  { %v2387_v0 = vpop.eup %2386  ;;  %v539_v2 = vadd.f32 %v535_v15, %v125_v14 }
 0x75c   :  { %584 = vrot.lane.b32.xlu0 %v2387_v0, %s2598_s23 }
 0x75d   :  { %2388 = vtanh.f32 %v539_v2  ;;  %v2211_v7 = vmul.f32 -1.442695, %v539_v2 }
 0x75e   :  { %2390 = vpow2.f32 %v2210_v5 }
 0x75f   :  { %2392 = vpow2.f32 %v2211_v7 }
 0x763   :  { %v2389_v16 = vpop.eup %2388 }
 0x764   :  { %586 = vrot.lane.b32.xlu1 %v2389_v16, %s2598_s23  ;;  %v2391_v17 = vpop.eup %2390 }
 0x765   :  { %v546_v18 = vadd.f32 1.0, %v2391_v17  ;;  %v2393_v19 = vpop.eup %2392 }
 0x766   :  { %v547_v20 = vadd.f32 1.0, %v2393_v19 }
 0x767   :  { %2394 = vrcp.f32 %v546_v18  ;;  %v559_v29 = vand.u32 2147483648, %v546_v18  ;;  %vm553_vm13 = vweird.f32 %v546_v18  ;;  %v557_v30 = vand.u32 2147483647, %v546_v18 }
 0x768   :  { %2396 = vrcp.f32 %v547_v20  ;;  %v574_v38 = vand.u32 2147483648, %v547_v20  ;;  %vm568_vm2 = vweird.f32 %v547_v20  ;;  %v572_v39 = vand.u32 2147483647, %v547_v20 }
 0x769   :  { %v560_v33 = vor.u32 1.1754944e-38, %v559_v29  ;;  %vm558_vm15 = vcmp.eq.f32.partialorder %v557_v30, 8.507059e+37 }
 0x76a   :  { %v575_v41 = vor.u32 1.1754944e-38, %v574_v38  ;;  %vm573_vm4 = vcmp.eq.f32.partialorder %v572_v39, 8.507059e+37 }
 0x76d   :  { %v2395_v21 = vpop.eup %2394 }
 0x76e   :  { %v549_v22 = vmul.f32 %v2395_v21, %v546_v18  ;;  %v2397_v24 = vpop.eup %2396  ;;  %vm554_vm12 = vweird.f32 %v2395_v21 }
 0x76f   :  { %v564_v26 = vmul.f32 %v2397_v24, %v547_v20  ;;  %vm555_vm14 = vmor %vm553_vm13, %vm554_vm12  ;;  %vm569_vm1 = vweird.f32 %v2397_v24 }
 0x770   :  { %v550_v23 = vsub.f32 1.0, %v549_v22  ;;  %vm570_vm3 = vmor %vm568_vm2, %vm569_vm1 }
 0x771   :  { %v565_v28 = vsub.f32 1.0, %v564_v26 }
 0x772   :  { %v551_v25 = vmul.f32 %v2395_v21, %v550_v23 }
 0x773   :  { %v566_v32 = vmul.f32 %v2397_v24, %v565_v28 }
 0x774   :  { %v552_v27 = vadd.f32 %v2395_v21, %v551_v25 }
 0x775   :  { %v567_v37 = vadd.f32 %v2397_v24, %v566_v32 }
 0x776   :  { %v556_v31 = vsel %vm555_vm14, %v2395_v21, %v552_v27 }
 0x777   :  { %v561_v34 = vsel %vm558_vm15, %v560_v33, %v556_v31  ;;  %v571_v40 = vsel %vm570_vm3, %v2397_v24, %v567_v37 }
 0x778   :  { %v576_v43 = vsel %vm573_vm4, %v575_v41, %v571_v40  ;;  %v580_v45 = vmul.f32 %v561_v34, %v2794_v48  ;;  %v41_v48 = vld [vmem:[%s3375_s0 + $0x40] sm:$0xff] }
 0x779   :  { %v581_v50 = vmul.f32 %v576_v43, %v2798_v54  ;;  %v53_v52 = vpack.c.bf16 %v42_v57, %v41_v48 }
 0x77b   :  { %2194 = vmatmul.msk.bf16.gmra.mxu0 %vm73_vm0, %v53_v52 }
 0x7ce   :  { %v585_v35 = vpop.permute.xlu0 %584 }
 0x7cf   :  { %v590_v36 = vmul.f32 %v585_v35, %v561_v34 }
 0x7d1   :  { %594 = vrot.lane.b32.xlu2 %v590_v36, %s2598_s23 }
 0x7d6   :  { %v587_v42 = vpop.permute.xlu1 %586 }
 0x7d7   :  { %v591_v44 = vmul.f32 %v587_v42, %v576_v43 }
 0x7d9   :  { %596 = vrot.lane.b32.xlu0 %v591_v44, %s2598_s23 }
 0x7f8   :  { %v127_v10 = vpop.f32.mrf.mxu0 }
 0x7f9   :  { %v128_v11 = vadd.f32 %v2713_v9, %v127_v10 }
 0x800   :  { %v129_v14 = vpop.f32.mrf.mxu0 }
 0x801   :  { %v130_v15 = vadd.f32 %v2713_v9, %v129_v14 }
 0x82b   :  { %v595_v46 = vpop.permute.xlu2 %594 }
 0x82c   :  { %v2827_v47 = vadd.f32 %v595_v46, %v580_v45 }
 0x82e   :  { %2398 = vtanh.f32 %v2827_v47 }
 0x834   :  { %v2399_v49 = vpop.eup %2398 }
 0x835   :  { %606 = vrot.lane.b32.xlu1 %v2399_v49, %s2598_s23 }
 0x84b   :  { %v597_v53 = vpop.permute.xlu0 %596 }
 0x84c   :  { %v2832_v55 = vadd.f32 %v597_v53, %v581_v50 }
 0x84e   :  { %2400 = vtanh.f32 %v2832_v55 }
 0x854   :  { %v2401_v58 = vpop.eup %2400 }
 0x855   :  { %608 = vrot.lane.b32.xlu2 %v2401_v58, %s2598_s23 }
 0x8a7   :  { %v607_v54 = vpop.permute.xlu1 %606 }
 0x8a8   :  { %v2843_v59 = vmul.f32 %v607_v54, %v561_v34  ;;  %v44_v54 = vld [vmem:[%s3375_s0 + $0x58] sm:$0xff] }
 0x8aa   :  { %628 = vrot.lane.b32.xlu0 %v2843_v59, %s2599_s28 }
 0x8af   :  { %v609_v56 = vpop.permute.xlu2 %608 }
 0x8b0   :  { %v2847_v63 = vmul.f32 %v609_v56, %v576_v43  ;;  %v45_v56 = vld [vmem:[%s3375_s0 + $0x60] sm:$0xff] }
 0x8b2   :  { %630 = vrot.lane.b32.xlu1 %v2847_v63, %s2599_s28 }
 0x91c   :  { %v629_v4 = vpop.permute.xlu0 %628 }
 0x91d   :  { %2212 = vmatmul.msk.f32.vlgmr.msra.gmra.mxu2 %vm147_vm9, %v629_v4  ;;  %v46_v4 = vld [vmem:[%s3375_s0 + $0x68] sm:$0xff] }
 0x924   :  { %v631_v6 = vpop.permute.xlu1 %630 }
 0x925   :  { %2213 = vmatmul.msk.f32.gmra.mxu2 %vm147_vm9, %v631_v6  ;;  %v55_v6 = vpack.c.bf16 %v46_v4, %v45_v56 }
 0x9a0   :  { %v653_v12 = vpop.f32.mrf.mxu2 }
 0x9a1   :  { %v659_v13 = vadd.f32 %v653_v12, %v128_v11  ;;  %v47_v12 = vld [vmem:[%s3375_s0 + $0x70] sm:$0xff] }
 0x9a3   :  { %2402 = vtanh.f32 %v659_v13  ;;  %v2214_v7 = vmul.f32 -1.442695, %v659_v13  ;;  %v48_v13 = vld [vmem:[%s3375_s0 + $0x78] sm:$0xff] }
 0x9a8   :  { %v656_v0 = vpop.f32.mrf.mxu2 }
 0x9a9   :  { %v2403_v2 = vpop.eup %2402  ;;  %v660_v16 = vadd.f32 %v656_v0, %v130_v15  ;;  %v56_v0 = vpack.c.bf16 %v48_v13, %v47_v12 }
 0x9aa   :  { %705 = vrot.lane.b32.xlu2 %v2403_v2, %s2598_s23 }
 0x9ab   :  { %2404 = vtanh.f32 %v660_v16  ;;  %v2215_v22 = vmul.f32 -1.442695, %v660_v16 }
 0x9ac   :  { %2406 = vpow2.f32 %v2214_v7 }
 0x9b1   :  { %v2405_v5 = vpop.eup %2404 }
 0x9b2   :  { %707 = vrot.lane.b32.xlu0 %v2405_v5, %s2598_s23  ;;  %v2407_v17 = vpop.eup %2406 }
 0x9b3   :  { %v667_v18 = vadd.f32 1.0, %v2407_v17 }
 0x9b5   :  { %2408 = vrcp.f32 %v667_v18  ;;  %v680_v25 = vand.u32 2147483648, %v667_v18  ;;  %vm674_vm6 = vweird.f32 %v667_v18  ;;  %v678_v26 = vand.u32 2147483647, %v667_v18 }
 0x9b6   :  { %2410 = vpow2.f32 %v2215_v22 }
 0x9b7   :  { %v681_v29 = vor.u32 1.1754944e-38, %v680_v25  ;;  %vm679_vm8 = vcmp.eq.f32.partialorder %v678_v26, 8.507059e+37 }
 0x9bb   :  { %v2409_v19 = vpop.eup %2408 }
 0x9bc   :  { %v670_v20 = vmul.f32 %v2409_v19, %v667_v18  ;;  %vm675_vm5 = vweird.f32 %v2409_v19  ;;  %v2411_v27 = vpop.eup %2410 }
 0x9bd   :  { %vm676_vm7 = vmor %vm674_vm6, %vm675_vm5  ;;  %v668_v30 = vadd.f32 1.0, %v2411_v27  ;;  %vm260_vm6 = vcmask 257024  }
 0x9be   :  { %v671_v21 = vsub.f32 1.0, %v670_v20 }
 0x9bf   :  { %2412 = vrcp.f32 %v668_v30  ;;  %v695_v39 = vand.u32 2147483648, %v668_v30  ;;  %vm689_vm11 = vweird.f32 %v668_v30  ;;  %v693_v40 = vand.u32 2147483647, %v668_v30 }
 0x9c0   :  { %v672_v23 = vmul.f32 %v2409_v19, %v671_v21 }
 0x9c1   :  { %v696_v42 = vor.u32 1.1754944e-38, %v695_v39  ;;  %vm694_vm13 = vcmp.eq.f32.partialorder %v693_v40, 8.507059e+37 }
 0x9c2   :  { %v673_v24 = vadd.f32 %v2409_v19, %v672_v23 }
 0x9c4   :  { %v677_v28 = vsel %vm676_vm7, %v2409_v19, %v673_v24 }
 0x9c5   :  { %v682_v32 = vsel %vm679_vm8, %v681_v29, %v677_v28  ;;  %v2413_v34 = vpop.eup %2412 }
 0x9c6   :  { %v685_v35 = vmul.f32 %v2413_v34, %v668_v30  ;;  %vm690_vm10 = vweird.f32 %v2413_v34  ;;  %v701_v46 = vmul.f32 %v682_v32, %v2827_v47  ;;  %v43_v47 = vld [vmem:[%s3375_s0 + $0x50] sm:$0xff] }
 0x9c7   :  { %vm691_vm12 = vmor %vm689_vm11, %vm690_vm10 }
 0x9c8   :  { %v686_v36 = vsub.f32 1.0, %v685_v35 }
 0x9ca   :  { %v687_v37 = vmul.f32 %v2413_v34, %v686_v36 }
 0x9cc   :  { %v688_v38 = vadd.f32 %v2413_v34, %v687_v37 }
 0x9ce   :  { %v692_v41 = vsel %vm691_vm12, %v2413_v34, %v688_v38 }
 0x9cf   :  { %v697_v44 = vsel %vm694_vm13, %v696_v42, %v692_v41 }
 0x9d0   :  { %v702_v53 = vmul.f32 %v697_v44, %v2832_v55  ;;  %v54_v55 = vpack.c.bf16 %v44_v54, %v43_v47 }
 0x9d2   :  { %2195 = vmatmul.msk.bf16.gmra.mxu0 %vm73_vm0, %v54_v55 }
 0x9e2   :  { %2196 = vmatmul.msk.bf16.gmra.mxu0 %vm73_vm0, %v55_v6 }
 0x9f2   :  { %2197 = vmatmul.msk.bf16.gmra.mxu0 %vm73_vm0, %v56_v0 }
 0xa04   :  { %v706_v31 = vpop.permute.xlu2 %705 }
 0xa05   :  { %v711_v33 = vmul.f32 %v706_v31, %v682_v32 }
 0xa07   :  { %715 = vrot.lane.b32.xlu1 %v711_v33, %s2598_s23 }
 0xa24   :  { %v708_v43 = vpop.permute.xlu0 %707 }
 0xa25   :  { %v712_v45 = vmul.f32 %v708_v43, %v697_v44 }
 0xa27   :  { %717 = vrot.lane.b32.xlu2 %v712_v45, %s2598_s23 }
 0xa4f   :  { %v132_v5 = vpop.f32.mrf.mxu0 }
 0xa50   :  { %v133_v21 = vadd.f32 %v2713_v9, %v132_v5 }
 0xa57   :  { %v134_v7 = vpop.f32.mrf.mxu0 }
 0xa58   :  { %v135_v25 = vadd.f32 %v2713_v9, %v134_v7 }
 0xa5f   :  { %v2900_v17 = vpop.f32.mrf.mxu0 }
 0xa67   :  { %v2902_v18 = vpop.f32.mrf.mxu0 }
 0xa6f   :  { %v2904_v19 = vpop.f32.mrf.mxu0 }
 0xa77   :  { %v2906_v20 = vpop.f32.mrf.mxu0 }
 0xa79   :  { %v716_v49 = vpop.permute.xlu1 %715 }
 0xa7a   :  { %v2860_v50 = vadd.f32 %v716_v49, %v701_v46 }
 0xa7c   :  { %2414 = vtanh.f32 %v2860_v50 }
 0xa81   :  { %v718_v58 = vpop.permute.xlu2 %717 }
 0xa82   :  { %v2415_v48 = vpop.eup %2414  ;;  %v2864_v57 = vadd.f32 %v718_v58, %v702_v53 }
 0xa83   :  { %727 = vrot.lane.b32.xlu0 %v2415_v48, %s2598_s23 }
 0xa84   :  { %2416 = vtanh.f32 %v2864_v57 }
 0xa8a   :  { %v2417_v52 = vpop.eup %2416 }
 0xa8b   :  { %729 = vrot.lane.b32.xlu1 %v2417_v52, %s2598_s23 }
 0xaf5   :  { %v728_v10 = vpop.permute.xlu0 %727 }
 0xaf6   :  { %v2883_v11 = vmul.f32 %v728_v10, %v682_v32  ;;  %v250_v10 = vpack.c.bf16 %v2736_v62, %v2736_v62  ;;  %v251_v62 = vpack.c.bf16 %v2740_v1, %v2740_v1  ;;  %v2324_v1 = vld [vmem:[%s3377_s4] sm:$0xff] }
 0xaf8   :  { %749 = vrot.lane.b32.xlu2 %v2883_v11, %s2599_s28 }
 0xafd   :  { %v730_v14 = vpop.permute.xlu1 %729 }
 0xafe   :  { %v2893_v15 = vmul.f32 %v730_v14, %v697_v44 }
 0xb00   :  { %751 = vrot.lane.b32.xlu0 %v2893_v15, %s2599_s28 }
 0xb52   :  { %v750_v2 = vpop.permute.xlu2 %749 }
 0xb53   :  { %2216 = vmatmul.msk.f32.vlgmr.msrb.gmra.mxu0 %vm147_vm9, %v750_v2 }
 0xb72   :  { %v752_v16 = vpop.permute.xlu0 %751 }
 0xb73   :  { %2217 = vmatmul.msk.f32.vlgmr.msra.gmra.mxu3 %vm147_vm9, %v752_v16 }
 0xbd0   :  { %v774_v22 = vpop.f32.mrf.mxu0 }
 0xbd1   :  { %v780_v23 = vadd.f32 %v774_v22, %v133_v21 }
 0xbd3   :  { %2418 = vtanh.f32 %v780_v23  ;;  %v2218_v29 = vmul.f32 -1.442695, %v780_v23 }
 0xbd9   :  { %v2419_v24 = vpop.eup %2418 }
 0xbda   :  { %826 = vrot.lane.b32.xlu1 %v2419_v24, %s2598_s23 }
 0xbf6   :  { %v777_v26 = vpop.f32.mrf.mxu3 }
 0xbf7   :  { %v781_v27 = vadd.f32 %v777_v26, %v135_v25 }
 0xbf9   :  { %2420 = vtanh.f32 %v781_v27  ;;  %v2219_v32 = vmul.f32 -1.442695, %v781_v27  ;;  %v2950_v27 = vld [vmem:[%s3379_s5 + $0x18] sm:$0xff] }
 0xbfa   :  { %2422 = vpow2.f32 %v2218_v29  ;;  %1275 = vmatpush.msrb.mxu1 %v2950_v27  ;;  %1384 = vmatpush.msra.mxu2 %v2950_v27  ;;  %v2958_v29 = vld [vmem:[%s3379_s5 + $0x10] sm:$0xff] }
 0xbfc   :  { %1276 = vmatpush.msrb.mxu1 %v2958_v29  ;;  %1385 = vmatpush.msra.mxu2 %v2958_v29 }
 0xbff   :  { %v2421_v28 = vpop.eup %2420 }
 0xc00   :  { %828 = vrot.lane.b32.xlu2 %v2421_v28, %s2598_s23  ;;  %v2423_v30 = vpop.eup %2422 }
 0xc01   :  { %v788_v31 = vadd.f32 1.0, %v2423_v30  ;;  %v2965_v30 = vld [vmem:[%s3379_s5 + $0x8] sm:$0xff] }
 0xc02   :  { %1277 = vmatpush.msrb.mxu1 %v2965_v30  ;;  %1386 = vmatpush.msra.mxu2 %v2965_v30 }
 0xc03   :  { %2424 = vrcp.f32 %v788_v31  ;;  %v801_v40 = vand.u32 2147483648, %v788_v31  ;;  %vm795_vm14 = vweird.f32 %v788_v31  ;;  %v799_v41 = vand.u32 2147483647, %v788_v31 }
 0xc04   :  { %2426 = vpow2.f32 %v2219_v32 }
 0xc05   :  { %v802_v44 = vor.u32 1.1754944e-38, %v801_v40  ;;  %vm800_vm1 = vcmp.eq.f32.partialorder %v799_v41, 8.507059e+37  ;;  %v3000_v40 = vld [vmem:[%s3378_s6] ss:$0 sm:$0xff] }
 0xc09   :  { %v2425_v33 = vpop.eup %2424 }
 0xc0a   :  { %v2427_v34 = vpop.eup %2426  ;;  %v791_v35 = vmul.f32 %v2425_v33, %v788_v31  ;;  %vm796_vm0 = vweird.f32 %v2425_v33  ;;  %v2972_v31 = vld [vmem:[%s3379_s5] sm:$0xff] }
 0xc0b   :  { %v789_v36 = vadd.f32 1.0, %v2427_v34  ;;  %vm797_vm15 = vmor %vm795_vm14, %vm796_vm0  ;;  %1278 = vmatpush.msrb.mxu1 %v2972_v31  ;;  %1387 = vmatpush.msra.mxu2 %v2972_v31 }
 0xc0c   :  { %v792_v37 = vsub.f32 1.0, %v791_v35 }
 0xc0d   :  { %2428 = vrcp.f32 %v789_v36  ;;  %v816_v52 = vand.u32 2147483648, %v789_v36  ;;  %vm810_vm3 = vweird.f32 %v789_v36  ;;  %v814_v47 = vand.u32 2147483647, %v789_v36 }
 0xc0e   :  { %v793_v9 = vmul.f32 %v2425_v33, %v792_v37 }
 0xc0f   :  { %v817_v55 = vor.u32 1.1754944e-38, %v816_v52  ;;  %vm815_vm5 = vcmp.eq.f32.partialorder %v814_v47, 8.507059e+37 }
 0xc10   :  { %v794_v39 = vadd.f32 %v2425_v33, %v793_v9 }
 0xc12   :  { %v798_v43 = vsel %vm797_vm15, %v2425_v33, %v794_v39  ;;  %v2990_v33 = vld [vmem:[%s3376_s3] ss:$0 sm:$0xff] }
 0xc13   :  { %v2429_v38 = vpop.eup %2428  ;;  %v803_v46 = vsel %vm800_vm1, %v802_v44, %v798_v43  ;;  %v138_v34 = vadd.f32 %v2990_v33, %v2900_v17  ;;  %v140_v9 = vadd.f32 %v2990_v33, %v2902_v18 }
 0xc14   :  { %v806_v42 = vmul.f32 %v2429_v38, %v789_v36  ;;  %vm811_vm2 = vweird.f32 %v2429_v38  ;;  %v822_v12 = vmul.f32 %v803_v46, %v2860_v50 }
 0xc15   :  { %vm812_vm4 = vmor %vm810_vm3, %vm811_vm2 }
 0xc16   :  { %v807_v45 = vsub.f32 1.0, %v806_v42 }
 0xc18   :  { %v808_v58 = vmul.f32 %v2429_v38, %v807_v45 }
 0xc1a   :  { %v809_v48 = vadd.f32 %v2429_v38, %v808_v58 }
 0xc1c   :  { %v813_v54 = vsel %vm812_vm4, %v2429_v38, %v809_v48 }
 0xc1d   :  { %v818_v4 = vsel %vm815_vm5, %v817_v55, %v813_v54 }
 0xc1e   :  { %v823_v2 = vmul.f32 %v818_v4, %v2864_v57  ;;  %v2325_v57 = vld [vmem:[%s3377_s4 + $0x8] sm:$0xff] }
 0xc1f   :  { %1220 = vmatpush.bf16.msrb.mxu3 %v2325_v57 }
 0xc23   :  { %1221 = vmatpush.bf16.msrb.mxu3 %v2324_v1 }
 0xc4c   :  { %v827_v49 = vpop.permute.xlu1 %826 }
 0xc4d   :  { %v832_v53 = vmul.f32 %v827_v49, %v803_v46 }
 0xc4f   :  { %836 = vrot.lane.b32.xlu0 %v832_v53, %s2598_s23 }
 0xc5a   :  { %v829_v56 = vpop.permute.xlu2 %828 }
 0xc5b   :  { %v833_v6 = vmul.f32 %v829_v56, %v818_v4 }
 0xc5d   :  { %838 = vrot.lane.b32.xlu1 %v833_v6, %s2598_s23 }
 0xc65   :  { %254 = vrot.lane.b32.xlu1 %v250_v10, %s2599_s28 }
 0xcc1   :  { %v837_v13 = vpop.permute.xlu0 %836 }
 0xcc2   :  { %v2918_v14 = vadd.f32 %v837_v13, %v822_v12 }
 0xcc4   :  { %2430 = vtanh.f32 %v2918_v14 }
 0xcca   :  { %v2431_v0 = vpop.eup %2430 }
 0xccb   :  { %848 = vrot.lane.b32.xlu2 %v2431_v0, %s2598_s23 }
 0xccf   :  { %v839_v16 = vpop.permute.xlu1 %838 }
 0xcd0   :  { %v2923_v5 = vadd.f32 %v839_v16, %v823_v2 }
 0xcd2   :  { %2432 = vtanh.f32 %v2923_v5 }
 0xcd3   :  { %256 = vrot.lane.b32.xlu2 %v251_v62, %s2599_s28 }
 0xcd7   :  { %v255_v50 = vpop.permute.xlu1 %254 }
 0xcd8   :  { %v2433_v7 = vpop.eup %2432  ;;  %261 = vst.msk [vmem:[#allocation2] sm:$0xf] %vm260_vm6, %v255_v50 }
 0xcd9   :  { %850 = vrot.lane.b32.xlu0 %v2433_v7, %s2598_s23 }
 0xd25   :  { %v849_v21 = vpop.permute.xlu2 %848 }
 0xd26   :  { %v2937_v22 = vmul.f32 %v849_v21, %v803_v46 }
 0xd28   :  { %870 = vrot.lane.b32.xlu0 %v2937_v22, %s2599_s28 }
 0xd2d   :  { %v257_v23 = vpop.permute.xlu2 %256 }
 0xd2e   :  { %262 = vst.msk [vmem:[#allocation2 + $0x4] sm:$0xf] %vm260_vm6, %v257_v23 }
 0xd35   :  { %v2316_v24 = vld [vmem:[#allocation2] sm:$0xff] }
 0xd36   :  { %2268 = vmatmul.msk.bf16.vlgmr.msrb.gmra.mxu3 %vm147_vm9, %v2316_v24 }
 0xd4b   :  { %v851_v25 = vpop.permute.xlu0 %850 }
 0xd4c   :  { %v2943_v26 = vmul.f32 %v851_v25, %v818_v4 }
 0xd4e   :  { %872 = vrot.lane.b32.xlu1 %v2943_v26, %s2599_s28 }
 0xd9a   :  { %v871_v28 = vpop.permute.xlu0 %870 }
 0xd9b   :  { %2220 = vmatmul.msk.f32.vlgmr.msra.gmra.mxu1 %vm147_vm9, %v871_v28 }
 0xd9c   :  { %1495 = vmatpush.msra.mxu1 %v2950_v27 }
 0xd9e   :  { %1496 = vmatpush.msra.mxu1 %v2958_v29 }
 0xda0   :  { %1497 = vmatpush.msra.mxu1 %v2965_v30 }
 0xda2   :  { %1498 = vmatpush.msra.mxu1 %v2972_v31 }
 0xdc0   :  { %v873_v32 = vpop.permute.xlu1 %872 }
 0xdc1   :  { %2221 = vmatmul.msk.f32.gmra.mxu1 %vm147_vm9, %v873_v32 }
 0xdc9   :  { %1279 = vmatmul.f32.vlgmr.msrb.gmra.mxu1 %v2597_v8 }
 0xdca   :  { %1717 = vmatpush.msrb.mxu1 %v2950_v27 }
 0xdcc   :  { %1718 = vmatpush.msrb.mxu1 %v2958_v29 }
 0xdce   :  { %1719 = vmatpush.msrb.mxu1 %v2965_v30 }
 0xdd0   :  { %1720 = vmatpush.msrb.mxu1 %v2972_v31 }
 0xdd1   :  { %1282 = vmatmul.f32.gmra.mxu1 %v2597_v8  ;;  %v1223_v8 = vpop.f32.mrf.mxu3 }
 0xdd2   :  { %v1224_v17 = vadd.f32 %v3000_v40, %v1223_v8 }
 0xdd9   :  { %v1225_v44 = vpop.f32.mrf.mxu3 }
 0xdda   :  { %v1226_v18 = vadd.f32 %v3000_v40, %v1225_v44 }
 0xe18   :  { %v895_v35 = vpop.f32.mrf.mxu1 }
 0xe19   :  { %v901_v36 = vadd.f32 %v895_v35, %v138_v34 }
 0xe1b   :  { %2434 = vtanh.f32 %v901_v36  ;;  %v2222_v49 = vmul.f32 -1.442695, %v901_v36 }
 0xe21   :  { %v2435_v37 = vpop.eup %2434 }
 0xe22   :  { %947 = vrot.lane.b32.xlu2 %v2435_v37, %s2598_s23 }
 0xe3e   :  { %v898_v38 = vpop.f32.mrf.mxu1 }
 0xe3f   :  { %v902_v39 = vadd.f32 %v898_v38, %v140_v9 }
 0xe41   :  { %2436 = vtanh.f32 %v902_v39  ;;  %v2223_v50 = vmul.f32 -1.442695, %v902_v39 }
 0xe46   :  { %v1280_v41 = vpop.f32.mrf.mxu1 }
 0xe47   :  { %v2437_v42 = vpop.eup %2436  ;;  %v1286_v43 = vadd.f32 %v1280_v41, %v1224_v17 }
 0xe48   :  { %949 = vrot.lane.b32.xlu0 %v2437_v42, %s2598_s23 }
 0xe49   :  { %2438 = vtanh.f32 %v1286_v43  ;;  %v2276_v1 = vmul.f32 -1.442695, %v1286_v43 }
 0xe4e   :  { %v1283_v45 = vpop.f32.mrf.mxu1 }
 0xe4f   :  { %v2439_v46 = vpop.eup %2438  ;;  %v1287_v53 = vadd.f32 %v1283_v45, %v1226_v18 }
 0xe50   :  { %1332 = vrot.lane.b32.xlu1 %v2439_v46, %s2598_s23 }
 0xe51   :  { %2440 = vtanh.f32 %v1287_v53  ;;  %v2277_v62 = vmul.f32 -1.442695, %v1287_v53 }
 0xe52   :  { %2442 = vpow2.f32 %v2222_v49 }
 0xe57   :  { %v2441_v58 = vpop.eup %2440 }
 0xe58   :  { %1334 = vrot.lane.b32.xlu2 %v2441_v58, %s2598_s23  ;;  %v2443_v48 = vpop.eup %2442 }
 0xe59   :  { %v909_v52 = vadd.f32 1.0, %v2443_v48 }
 0xe5b   :  { %2444 = vrcp.f32 %v909_v52  ;;  %v922_v6 = vand.u32 2147483648, %v909_v52  ;;  %vm916_vm8 = vweird.f32 %v909_v52  ;;  %v920_v10 = vand.u32 2147483647, %v909_v52 }
 0xe5c   :  { %2446 = vpow2.f32 %v2277_v62 }
 0xe5d   :  { %v923_v13 = vor.u32 1.1754944e-38, %v922_v6  ;;  %vm921_vm11 = vcmp.eq.f32.partialorder %v920_v10, 8.507059e+37  ;;  %2448 = vpow2.f32 %v2223_v50 }
 0xe61   :  { %v2445_v47 = vpop.eup %2444 }
 0xe62   :  { %v912_v54 = vmul.f32 %v2445_v47, %v909_v52  ;;  %vm917_vm7 = vweird.f32 %v2445_v47  ;;  %v2447_v7 = vpop.eup %2446 }
 0xe63   :  { %vm918_vm10 = vmor %vm916_vm8, %vm917_vm7  ;;  %v1295_v57 = vadd.f32 1.0, %v2447_v7  ;;  %v2449_v21 = vpop.eup %2448 }
 0xe64   :  { %v913_v55 = vsub.f32 1.0, %v912_v54  ;;  %v910_v23 = vadd.f32 1.0, %v2449_v21 }
 0xe65   :  { %2450 = vrcp.f32 %v1295_v57  ;;  %v1322_v8 = vand.u32 2147483648, %v1295_v57  ;;  %vm1316_vm13 = vweird.f32 %v1295_v57  ;;  %v1320_v17 = vand.u32 2147483647, %v1295_v57 }
 0xe66   :  { %v914_v56 = vmul.f32 %v2445_v47, %v913_v55  ;;  %2452 = vpow2.f32 %v2276_v1  ;;  %v937_v58 = vand.u32 2147483648, %v910_v23  ;;  %vm931_vm1 = vweird.f32 %v910_v23 }
 0xe67   :  { %2454 = vrcp.f32 %v910_v23  ;;  %v1323_v44 = vor.u32 1.1754944e-38, %v1322_v8  ;;  %vm1321_vm14 = vcmp.eq.f32.partialorder %v1320_v17, 8.507059e+37  ;;  %v935_v48 = vand.u32 2147483647, %v910_v23 }
 0xe68   :  { %v915_v4 = vadd.f32 %v2445_v47, %v914_v56  ;;  %v938_v54 = vor.u32 1.1754944e-38, %v937_v58 }
 0xe69   :  { %vm936_vm3 = vcmp.eq.f32.partialorder %v935_v48, 8.507059e+37  ;;  %v143_v48 = vadd.f32 %v2990_v33, %v2904_v19 }
 0xe6a   :  { %v919_v12 = vsel %vm918_vm10, %v2445_v47, %v915_v4 }
 0xe6b   :  { %v3007_v2 = vsel %vm921_vm11, %v923_v13, %v919_v12  ;;  %v2451_v24 = vpop.eup %2450 }
 0xe6c   :  { %v2453_v25 = vpop.eup %2452  ;;  %v1312_v28 = vmul.f32 %v2451_v24, %v1295_v57  ;;  %vm1317_vm12 = vweird.f32 %v2451_v24  ;;  %v943_v7 = vmul.f32 %v3007_v2, %v2918_v14 }
 0xe6d   :  { %v1294_v32 = vadd.f32 1.0, %v2453_v25  ;;  %v2455_v35 = vpop.eup %2454  ;;  %vm1318_vm0 = vmor %vm1316_vm13, %vm1317_vm12 }
 0xe6e   :  { %v1313_v34 = vsub.f32 1.0, %v1312_v28  ;;  %v927_v37 = vmul.f32 %v2455_v35, %v910_v23  ;;  %vm932_vm15 = vweird.f32 %v2455_v35 }
 0xe6f   :  { %2456 = vrcp.f32 %v1294_v32  ;;  %vm933_vm2 = vmor %vm931_vm1, %vm932_vm15  ;;  %v1307_v10 = vand.u32 2147483648, %v1294_v32  ;;  %vm1301_vm5 = vweird.f32 %v1294_v32  ;;  %v1305_v12 = vand.u32 2147483647, %v1294_v32 }
 0xe70   :  { %v1314_v36 = vmul.f32 %v2451_v24, %v1313_v34  ;;  %v928_v38 = vsub.f32 1.0, %v927_v37 }
 0xe71   :  { %vm1306_vm8 = vcmp.eq.f32.partialorder %v1305_v12, 8.507059e+37 }
 0xe72   :  { %v1315_v9 = vadd.f32 %v2451_v24, %v1314_v36  ;;  %v929_v42 = vmul.f32 %v2455_v35, %v928_v38  ;;  %v372_v36 = vpack.c.bf16 %v2773_v61, %v2773_v61 }
 0xe74   :  { %v1319_v41 = vsel %vm1318_vm0, %v2451_v24, %v1315_v9  ;;  %v930_v49 = vadd.f32 %v2455_v35, %v929_v42 }
 0xe75   :  { %v2457_v39 = vpop.eup %2456  ;;  %v3011_v45 = vsel %vm1321_vm14, %v1323_v44, %v1319_v41 }
 0xe76   :  { %v1297_v43 = vmul.f32 %v2457_v39, %v1294_v32  ;;  %v934_v52 = vsel %vm933_vm2, %v2455_v35, %v930_v49  ;;  %vm1302_vm4 = vweird.f32 %v2457_v39  ;;  %v1329_v28 = vmul.f32 0.0, %v3011_v45 }
 0xe77   :  { %v939_v56 = vsel %vm936_vm3, %v938_v54, %v934_v52  ;;  %vm1303_vm7 = vmor %vm1301_vm5, %vm1302_vm4 }
 0xe78   :  { %v1298_v53 = vsub.f32 1.0, %v1297_v43  ;;  %v944_v14 = vmul.f32 %v939_v56, %v2923_v5 }
 0xe7a   :  { %v1299_v47 = vmul.f32 %v2457_v39, %v1298_v53 }
 0xe7c   :  { %v948_v0 = vpop.permute.xlu2 %947  ;;  %v1300_v6 = vadd.f32 %v2457_v39, %v1299_v47 }
 0xe7d   :  { %v953_v16 = vmul.f32 %v948_v0, %v3007_v2  ;;  %v1308_v0 = vor.u32 1.1754944e-38, %v1307_v10 }
 0xe7e   :  { %v1304_v13 = vsel %vm1303_vm7, %v2457_v39, %v1300_v6  ;;  %v373_v39 = vpack.c.bf16 %v2777_v3, %v2777_v3 }
 0xe7f   :  { %957 = vrot.lane.b32.xlu0 %v953_v16, %s2598_s23  ;;  %v1309_v62 = vsel %vm1306_vm8, %v1308_v0, %v1304_v13 }
 0xe80   :  { %v1328_v23 = vmul.f32 0.0, %v1309_v62 }
 0xeb2   :  { %v1335_v18 = vpop.permute.xlu2 %1334 }
 0xeb3   :  { %v1339_v46 = vmul.f32 %v1335_v18, %v3011_v45 }
 0xeb5   :  { %1344 = vrot.lane.b32.xlu0 %v1339_v46, %s2598_s23 }
 0xeba   :  { %v950_v55 = vpop.permute.xlu0 %949 }
 0xebb   :  { %v954_v4 = vmul.f32 %v950_v55, %v939_v56 }
 0xebd   :  { %959 = vrot.lane.b32.xlu1 %v954_v4, %s2598_s23 }
 0xec2   :  { %v1333_v16 = vpop.permute.xlu1 %1332 }
 0xec3   :  { %v1338_v50 = vmul.f32 %v1333_v16, %v1309_v62 }
 0xec5   :  { %1342 = vrot.lane.b32.xlu2 %v1338_v50, %s2598_s23 }
 0xef1   :  { %v958_v57 = vpop.permute.xlu0 %957 }
 0xef2   :  { %v3019_v1 = vadd.f32 %v958_v57, %v943_v7 }
 0xef4   :  { %2458 = vtanh.f32 %v3019_v1 }
 0xefa   :  { %v2459_v21 = vpop.eup %2458 }
 0xefb   :  { %969 = vrot.lane.b32.xlu1 %v2459_v21, %s2598_s23 }
 0xf1f   :  { %v1343_v24 = vpop.permute.xlu2 %1342 }
 0xf20   :  { %v3023_v25 = vadd.f32 %v1343_v24, %v1328_v23 }
 0xf22   :  { %2460 = vtanh.f32 %v3023_v25 }
 0xf27   :  { %v1345_v32 = vpop.permute.xlu0 %1344 }
 0xf28   :  { %v2461_v34 = vpop.eup %2460  ;;  %v3027_v35 = vadd.f32 %v1345_v32, %v1329_v28 }
 0xf29   :  { %1354 = vrot.lane.b32.xlu0 %v2461_v34, %s2598_s23 }
 0xf2a   :  { %2462 = vtanh.f32 %v3027_v35 }
 0xf2f   :  { %v960_v37 = vpop.permute.xlu1 %959 }
 0xf30   :  { %v2463_v9 = vpop.eup %2462  ;;  %v3034_v38 = vadd.f32 %v960_v37, %v944_v14 }
 0xf31   :  { %376 = vrot.lane.b32.xlu0 %v372_v36, %s2599_s28  ;;  %1356 = vrot.lane.b32.xlu1 %v2463_v9, %s2598_s23 }
 0xf32   :  { %2464 = vtanh.f32 %v3034_v38 }
 0xf38   :  { %v2465_v8 = vpop.eup %2464 }
 0xf39   :  { %378 = vrot.lane.b32.xlu1 %v373_v39, %s2599_s28  ;;  %971 = vrot.lane.b32.xlu2 %v2465_v8, %s2598_s23 }
 0xf6d   :  { %v970_v5 = vpop.permute.xlu1 %969 }
 0xf6e   :  { %v3044_v61 = vmul.f32 %v970_v5, %v3007_v2 }
 0xf70   :  { %991 = vrot.lane.b32.xlu2 %v3044_v61, %s2599_s28 }
 0xf93   :  { %v972_v17 = vpop.permute.xlu2 %971 }
 0xf94   :  { %v3048_v41 = vmul.f32 %v972_v17, %v939_v56 }
 0xf96   :  { %993 = vrot.lane.b32.xlu2 %v3048_v41, %s2599_s28 }
 0xf9b   :  { %v1355_v42 = vpop.permute.xlu0 %1354 }
 0xf9c   :  { %v3052_v3 = vmul.f32 %v1355_v42, %v1309_v62 }
 0xf9e   :  { %1364 = vrot.lane.b32.xlu0 %v3052_v3, %s2599_s28 }
 0xfa3   :  { %v377_v43 = vpop.permute.xlu0 %376  ;;  %v1357_v44 = vpop.permute.xlu1 %1356 }
 0xfa4   :  { %382 = vst.msk [vmem:[#allocation2 + $0x8] sm:$0xf] %vm260_vm6, %v377_v43  ;;  %v3058_v2 = vmul.f32 %v1357_v44, %v3011_v45 }
 0xfa6   :  { %1366 = vrot.lane.b32.xlu1 %v3058_v2, %s2599_s28 }
 0xfab   :  { %v379_v18 = vpop.permute.xlu1 %378 }
 0xfac   :  { %383 = vst.msk [vmem:[#allocation2 + $0xc] sm:$0xf] %vm260_vm6, %v379_v18 }
 0xfb3   :  { %v2317_v46 = vld [vmem:[#allocation2 + $0x8] sm:$0xff] }
 0xfb4   :  { %2269 = vmatmul.msk.bf16.gmra.mxu3 %vm147_vm9, %v2317_v46 }
 0xfca   :  { %v992_v49 = vpop.permute.xlu2 %991 }
 0xfcb   :  { %2224 = vmatmul.msk.f32.vlgmr.msrb.gmra.mxu2 %vm147_vm9, %v992_v49 }
 0xfcc   :  { %1606 = vmatpush.msrb.mxu2 %v2950_v27 }
 0xfce   :  { %1607 = vmatpush.msrb.mxu2 %v2958_v29 }
 0xfd0   :  { %1608 = vmatpush.msrb.mxu2 %v2965_v30 }
 0xfd2   :  { %1609 = vmatpush.msrb.mxu2 %v2972_v31 }
 0xff0   :  { %v994_v45 = vpop.permute.xlu2 %993 }
 0xff1   :  { %2225 = vmatmul.msk.f32.gmra.mxu2 %vm147_vm9, %v994_v45 }
0x1010   :  { %v1365_v53 = vpop.permute.xlu0 %1364 }
0x1011   :  { %2278 = vmatmul.msk.f32.vlgmr.msra.gmra.mxu2 %vm147_vm9, %v1365_v53 }
0x1012   :  { %1828 = vmatpush.msra.mxu2 %v2950_v27 }
0x1014   :  { %1829 = vmatpush.msra.mxu2 %v2958_v29 }
0x1016   :  { %1830 = vmatpush.msra.mxu2 %v2965_v30 }
0x1018   :  { %v1367_v58 = vpop.permute.xlu1 %1366  ;;  %1831 = vmatpush.msra.mxu2 %v2972_v31 }
0x1019   :  { %2279 = vmatmul.msk.f32.gmra.mxu2 %vm147_vm9, %v1367_v58 }
0x1037   :  { %v1228_v55 = vpop.f32.mrf.mxu3 }
0x1038   :  { %v1229_v56 = vadd.f32 %v3000_v40, %v1228_v55  ;;  %v493_v55 = vpack.c.bf16 %v2803_v51, %v2803_v51  ;;  %v494_v51 = vpack.c.bf16 %v2814_v60, %v2814_v60 }
0x103f   :  { %v1230_v10 = vpop.f32.mrf.mxu3 }
0x1040   :  { %v1231_v12 = vadd.f32 %v3000_v40, %v1230_v10 }
0x104e   :  { %v1016_v52 = vpop.f32.mrf.mxu2 }
0x104f   :  { %v3078_v47 = vadd.f32 %v1016_v52, %v143_v48 }
0x1074   :  { %v3080_v54 = vpop.f32.mrf.mxu2 }
0x1094   :  { %v1389_v4 = vpop.f32.mrf.mxu2 }
0x1095   :  { %v1395_v6 = vadd.f32 %v1389_v4, %v1229_v56 }
0x1097   :  { %2466 = vtanh.f32 %v1395_v6  ;;  %v2280_v33 = vmul.f32 -1.442695, %v1395_v6 }
0x109c   :  { %v1392_v13 = vpop.f32.mrf.mxu2 }
0x109d   :  { %v2467_v0 = vpop.eup %2466  ;;  %v1396_v16 = vadd.f32 %v1392_v13, %v1231_v12 }
0x109e   :  { %1441 = vrot.lane.b32.xlu2 %v2467_v0, %s2598_s23 }
0x109f   :  { %2468 = vtanh.f32 %v1396_v16  ;;  %v2281_v23 = vmul.f32 -1.442695, %v1396_v16 }
0x10a0   :  { %2470 = vpow2.f32 %v2280_v33 }
0x10a5   :  { %v2469_v19 = vpop.eup %2468 }
0x10a6   :  { %1443 = vrot.lane.b32.xlu0 %v2469_v19, %s2598_s23  ;;  %v2471_v62 = vpop.eup %2470 }
0x10a7   :  { %v1403_v50 = vadd.f32 1.0, %v2471_v62 }
0x10a9   :  { %2472 = vrcp.f32 %v1403_v50  ;;  %v1416_v32 = vand.u32 2147483648, %v1403_v50  ;;  %vm1410_vm11 = vweird.f32 %v1403_v50  ;;  %v1414_v34 = vand.u32 2147483647, %v1403_v50 }
0x10aa   :  { %2474 = vpow2.f32 %v2281_v23 }
0x10ab   :  { %v1417_v37 = vor.u32 1.1754944e-38, %v1416_v32  ;;  %vm1415_vm13 = vcmp.eq.f32.partialorder %v1414_v34, 8.507059e+37 }
0x10af   :  { %v2473_v7 = vpop.eup %2472 }
0x10b0   :  { %v1406_v57 = vmul.f32 %v2473_v7, %v1403_v50  ;;  %vm1411_vm10 = vweird.f32 %v2473_v7  ;;  %v2475_v14 = vpop.eup %2474 }
0x10b1   :  { %vm1412_vm12 = vmor %vm1410_vm11, %vm1411_vm10  ;;  %v1404_v9 = vadd.f32 1.0, %v2475_v14 }
0x10b2   :  { %v1407_v21 = vsub.f32 1.0, %v1406_v57 }
0x10b3   :  { %2476 = vrcp.f32 %v1404_v9  ;;  %v1431_v46 = vand.u32 2147483648, %v1404_v9  ;;  %vm1425_vm14 = vweird.f32 %v1404_v9  ;;  %v1429_v49 = vand.u32 2147483647, %v1404_v9 }
0x10b4   :  { %v1408_v24 = vmul.f32 %v2473_v7, %v1407_v21 }
0x10b5   :  { %v1432_v53 = vor.u32 1.1754944e-38, %v1431_v46  ;;  %vm1430_vm1 = vcmp.eq.f32.partialorder %v1429_v49, 8.507059e+37 }
0x10b6   :  { %v1409_v28 = vadd.f32 %v2473_v7, %v1408_v24 }
0x10b8   :  { %v1413_v36 = vsel %vm1412_vm12, %v2473_v7, %v1409_v28 }
0x10b9   :  { %v1418_v8 = vsel %vm1415_vm13, %v1417_v37, %v1413_v36  ;;  %v2477_v17 = vpop.eup %2476 }
0x10ba   :  { %v1421_v42 = vmul.f32 %v2477_v17, %v1404_v9  ;;  %vm1426_vm0 = vweird.f32 %v2477_v17  ;;  %v1437_v56 = vmul.f32 %v1418_v8, %v3023_v25 }
0x10bb   :  { %vm1427_vm15 = vmor %vm1425_vm14, %vm1426_vm0 }
0x10bc   :  { %v1422_v43 = vsub.f32 1.0, %v1421_v42 }
0x10be   :  { %v1423_v44 = vmul.f32 %v2477_v17, %v1422_v43 }
0x10c0   :  { %v1424_v18 = vadd.f32 %v2477_v17, %v1423_v44 }
0x10c2   :  { %v1428_v45 = vsel %vm1427_vm15, %v2477_v17, %v1424_v18 }
0x10c3   :  { %v1433_v48 = vsel %vm1430_vm1, %v1432_v53, %v1428_v45 }
0x10c4   :  { %v1438_v10 = vmul.f32 %v1433_v48, %v3027_v35 }
0x10f8   :  { %v1442_v39 = vpop.permute.xlu2 %1441 }
0x10f9   :  { %v1447_v5 = vmul.f32 %v1442_v39, %v1418_v8 }
0x10fb   :  { %1451 = vrot.lane.b32.xlu1 %v1447_v5, %s2598_s23 }
0x1118   :  { %v1444_v58 = vpop.permute.xlu0 %1443 }
0x1119   :  { %v1448_v52 = vmul.f32 %v1444_v58, %v1433_v48 }
0x111b   :  { %1453 = vrot.lane.b32.xlu2 %v1448_v52, %s2598_s23 }
0x1123   :  { %497 = vrot.lane.b32.xlu2 %v493_v55, %s2599_s28 }
0x116d   :  { %v1452_v4 = vpop.permute.xlu1 %1451 }
0x116e   :  { %v3092_v6 = vadd.f32 %v1452_v4, %v1437_v56 }
0x1170   :  { %2478 = vtanh.f32 %v3092_v6 }
0x1175   :  { %v1454_v12 = vpop.permute.xlu2 %1453 }
0x1176   :  { %v2479_v13 = vpop.eup %2478  ;;  %v3096_v0 = vadd.f32 %v1454_v12, %v1438_v10 }
0x1177   :  { %1463 = vrot.lane.b32.xlu0 %v2479_v13, %s2598_s23 }
0x1178   :  { %2480 = vtanh.f32 %v3096_v0 }
0x117d   :  { %v498_v16 = vpop.permute.xlu2 %497 }
0x117e   :  { %v2481_v25 = vpop.eup %2480  ;;  %503 = vst.msk [vmem:[#allocation2 + $0x10] sm:$0xf] %vm260_vm6, %v498_v16 }
0x117f   :  { %499 = vrot.lane.b32.xlu0 %v494_v51, %s2599_s28  ;;  %1465 = vrot.lane.b32.xlu1 %v2481_v25, %s2598_s23 }
0x11e9   :  { %v1464_v35 = vpop.permute.xlu0 %1463 }
0x11ea   :  { %v3105_v19 = vmul.f32 %v1464_v35, %v1418_v8 }
0x11ec   :  { %1475 = vrot.lane.b32.xlu1 %v3105_v19, %s2599_s28 }
0x11f1   :  { %v500_v33 = vpop.permute.xlu0 %499  ;;  %v1466_v62 = vpop.permute.xlu1 %1465 }
0x11f2   :  { %504 = vst.msk [vmem:[#allocation2 + $0x14] sm:$0xf] %vm260_vm6, %v500_v33  ;;  %v3110_v50 = vmul.f32 %v1466_v62, %v1433_v48 }
0x11f4   :  { %1477 = vrot.lane.b32.xlu2 %v3110_v50, %s2599_s28 }
0x11f9   :  { %v2318_v60 = vld [vmem:[#allocation2 + $0x10] sm:$0xff] }
0x11fa   :  { %2270 = vmatmul.msk.bf16.gmra.mxu3 %vm147_vm9, %v2318_v60 }
0x124e   :  { %v1478_v57 = vpop.permute.xlu2 %1477 }
0x125e   :  { %v1476_v7 = vpop.permute.xlu1 %1475 }
0x125f   :  { %2282 = vmatmul.msk.f32.vlgmr.msra.gmra.mxu1 %vm147_vm9, %v1476_v7 }
0x1260   :  { %1939 = vmatpush.msra.mxu1 %v2950_v27 }
0x1262   :  { %1940 = vmatpush.msra.mxu1 %v2958_v29 }
0x1264   :  { %1941 = vmatpush.msra.mxu1 %v2965_v30 }
0x1266   :  { %1942 = vmatpush.msra.mxu1 %v2972_v31 }
0x1267   :  { %2283 = vmatmul.msk.f32.gmra.mxu1 %vm147_vm9, %v1478_v57 }
0x127d   :  { %v1233_v21 = vpop.f32.mrf.mxu3 }
0x127e   :  { %v1234_v23 = vadd.f32 %v3000_v40, %v1233_v21  ;;  %v614_v21 = vpack.c.bf16 %v2843_v59, %v2843_v59 }
0x1285   :  { %v1235_v32 = vpop.f32.mrf.mxu3 }
0x1286   :  { %v1236_v34 = vadd.f32 %v3000_v40, %v1235_v32 }
0x12dc   :  { %v1500_v24 = vpop.f32.mrf.mxu1 }
0x12dd   :  { %v1506_v28 = vadd.f32 %v1500_v24, %v1234_v23 }
0x12df   :  { %2482 = vtanh.f32 %v1506_v28  ;;  %v2284_v39 = vmul.f32 -1.442695, %v1506_v28 }
0x12e4   :  { %v1503_v14 = vpop.f32.mrf.mxu1 }
0x12e5   :  { %v2483_v36 = vpop.eup %2482  ;;  %v1507_v37 = vadd.f32 %v1503_v14, %v1236_v34  ;;  %v615_v34 = vpack.c.bf16 %v2847_v63, %v2847_v63 }
0x12e6   :  { %1552 = vrot.lane.b32.xlu0 %v2483_v36, %s2598_s23 }
0x12e7   :  { %2484 = vtanh.f32 %v1507_v37  ;;  %v2285_v8 = vmul.f32 -1.442695, %v1507_v37 }
0x12e8   :  { %2486 = vpow2.f32 %v2284_v39  ;;  %v1471_v39 = vmax.f32 %v3052_v3, %v3105_v19 }
0x12e9   :  { %2488 = vpow2.f32 %v2285_v8 }
0x12ed   :  { %v2485_v9 = vpop.eup %2484 }
0x12ee   :  { %1554 = vrot.lane.b32.xlu1 %v2485_v9, %s2598_s23  ;;  %v2487_v5 = vpop.eup %2486 }
0x12ef   :  { %v1514_v17 = vadd.f32 1.0, %v2487_v5  ;;  %v2489_v42 = vpop.eup %2488 }
0x12f0   :  { %v1515_v43 = vadd.f32 1.0, %v2489_v42 }
0x12f1   :  { %2490 = vrcp.f32 %v1514_v17  ;;  %v1527_v52 = vand.u32 2147483648, %v1514_v17  ;;  %vm1521_vm3 = vweird.f32 %v1514_v17  ;;  %v1525_v55 = vand.u32 2147483647, %v1514_v17 }
0x12f2   :  { %2492 = vrcp.f32 %v1515_v43  ;;  %v1542_v25 = vand.u32 2147483648, %v1515_v43  ;;  %vm1536_vm8 = vweird.f32 %v1515_v43  ;;  %v1540_v35 = vand.u32 2147483647, %v1515_v43 }
0x12f3   :  { %v1528_v10 = vor.u32 1.1754944e-38, %v1527_v52  ;;  %vm1526_vm5 = vcmp.eq.f32.partialorder %v1525_v55, 8.507059e+37 }
0x12f4   :  { %v1543_v62 = vor.u32 1.1754944e-38, %v1542_v25  ;;  %vm1541_vm11 = vcmp.eq.f32.partialorder %v1540_v35, 8.507059e+37 }
0x12f7   :  { %v2491_v44 = vpop.eup %2490 }
0x12f8   :  { %v1517_v18 = vmul.f32 %v2491_v44, %v1514_v17  ;;  %v2493_v49 = vpop.eup %2492  ;;  %vm1522_vm2 = vweird.f32 %v2491_v44  ;;  %v1472_v17 = vmax.f32 %v3058_v2, %v3110_v50 }
0x12f9   :  { %v1532_v53 = vmul.f32 %v2493_v49, %v1515_v43  ;;  %vm1523_vm4 = vmor %vm1521_vm3, %vm1522_vm2  ;;  %vm1537_vm7 = vweird.f32 %v2493_v49 }
0x12fa   :  { %v1518_v46 = vsub.f32 1.0, %v1517_v18  ;;  %vm1538_vm10 = vmor %vm1536_vm8, %vm1537_vm7 }
0x12fb   :  { %v1533_v48 = vsub.f32 1.0, %v1532_v53 }
0x12fc   :  { %v1519_v45 = vmul.f32 %v2491_v44, %v1518_v46 }
0x12fd   :  { %v1534_v4 = vmul.f32 %v2493_v49, %v1533_v48 }
0x12fe   :  { %v1520_v58 = vadd.f32 %v2491_v44, %v1519_v45 }
0x12ff   :  { %v1535_v16 = vadd.f32 %v2493_v49, %v1534_v4 }
0x1300   :  { %v1524_v56 = vsel %vm1523_vm4, %v2491_v44, %v1520_v58 }
0x1301   :  { %v1529_v13 = vsel %vm1526_vm5, %v1528_v10, %v1524_v56  ;;  %v1539_v33 = vsel %vm1538_vm10, %v2493_v49, %v1535_v16 }
0x1302   :  { %v1544_v7 = vsel %vm1541_vm11, %v1543_v62, %v1539_v33  ;;  %v1548_v23 = vmul.f32 %v1529_v13, %v3092_v6 }
0x1303   :  { %v1549_v14 = vmul.f32 %v1544_v7, %v3096_v0 }
0x1358   :  { %v1553_v12 = vpop.permute.xlu0 %1552 }
0x1359   :  { %v1558_v51 = vmul.f32 %v1553_v12, %v1529_v13 }
0x135b   :  { %1562 = vrot.lane.b32.xlu2 %v1558_v51, %s2598_s23 }
0x1360   :  { %v1555_v60 = vpop.permute.xlu1 %1554 }
0x1361   :  { %v1559_v57 = vmul.f32 %v1555_v60, %v1544_v7 }
0x1363   :  { %1564 = vrot.lane.b32.xlu0 %v1559_v57, %s2598_s23 }
0x136b   :  { %618 = vrot.lane.b32.xlu0 %v614_v21, %s2599_s28 }
0x13b5   :  { %v1563_v24 = vpop.permute.xlu2 %1562 }
0x13b6   :  { %v3131_v28 = vadd.f32 %v1563_v24, %v1548_v23 }
0x13b8   :  { %2494 = vtanh.f32 %v3131_v28 }
0x13be   :  { %v2495_v32 = vpop.eup %2494 }
0x13bf   :  { %1574 = vrot.lane.b32.xlu1 %v2495_v32, %s2598_s23 }
0x13c7   :  { %620 = vrot.lane.b32.xlu1 %v615_v34, %s2599_s28 }
0x13d5   :  { %v1565_v59 = vpop.permute.xlu0 %1564 }
0x13d6   :  { %v3139_v36 = vadd.f32 %v1565_v59, %v1549_v14 }
0x13d8   :  { %2496 = vtanh.f32 %v3139_v36 }
0x13dd   :  { %v619_v6 = vpop.permute.xlu0 %618 }
0x13de   :  { %v2497_v37 = vpop.eup %2496  ;;  %624 = vst.msk [vmem:[#allocation2 + $0x18] sm:$0xf] %vm260_vm6, %v619_v6 }
0x13df   :  { %1576 = vrot.lane.b32.xlu2 %v2497_v37, %s2598_s23 }
0x1431   :  { %v1575_v9 = vpop.permute.xlu1 %1574 }
0x1432   :  { %v1580_v63 = vmul.f32 %v1575_v9, %v1529_v13 }
0x1434   :  { %v3146_v8 = vmax.f32 %v1471_v39, %v1580_v63  ;;  %1586 = vrot.lane.b32.xlu2 %v1580_v63, %s2599_s28  ;;  %v735_v63 = vpack.c.bf16 %v2883_v11, %v2883_v11  ;;  %v736_v11 = vpack.c.bf16 %v2893_v15, %v2893_v15 }
0x1439   :  { %v621_v0 = vpop.permute.xlu1 %620  ;;  %v1577_v5 = vpop.permute.xlu2 %1576 }
0x143a   :  { %625 = vst.msk [vmem:[#allocation2 + $0x1c] sm:$0xf] %vm260_vm6, %v621_v0  ;;  %v1581_v42 = vmul.f32 %v1577_v5, %v1544_v7 }
0x143c   :  { %v3152_v43 = vmax.f32 %v1472_v17, %v1581_v42  ;;  %1588 = vrot.lane.b32.xlu0 %v1581_v42, %s2599_s28 }
0x1441   :  { %v2319_v44 = vld [vmem:[#allocation2 + $0x18] sm:$0xff] }
0x1442   :  { %2271 = vmatmul.msk.bf16.gmra.mxu3 %vm147_vm9, %v2319_v44 }
0x148e   :  { %v1587_v3 = vpop.permute.xlu2 %1586 }
0x148f   :  { %2286 = vmatmul.msk.f32.vlgmr.msrb.gmra.mxu2 %vm147_vm9, %v1587_v3 }
0x1490   :  { %2050 = vmatpush.msrb.mxu2 %v2950_v27 }
0x1492   :  { %2051 = vmatpush.msrb.mxu2 %v2958_v29 }
0x1494   :  { %2052 = vmatpush.msrb.mxu2 %v2965_v30 }
0x1496   :  { %2053 = vmatpush.msrb.mxu2 %v2972_v31 }
0x14ae   :  { %v1589_v2 = vpop.permute.xlu0 %1588 }
0x14af   :  { %2287 = vmatmul.msk.f32.gmra.mxu2 %vm147_vm9, %v1589_v2 }
0x14c5   :  { %v1238_v19 = vpop.f32.mrf.mxu3 }
0x14c6   :  { %v1239_v50 = vadd.f32 %v3000_v40, %v1238_v19 }
0x14cd   :  { %v1240_v45 = vpop.f32.mrf.mxu3 }
0x14ce   :  { %v1241_v27 = vadd.f32 %v3000_v40, %v1240_v45 }
0x1512   :  { %v1611_v18 = vpop.f32.mrf.mxu2 }
0x1513   :  { %v1617_v46 = vadd.f32 %v1611_v18, %v1239_v50 }
0x1515   :  { %2498 = vtanh.f32 %v1617_v46  ;;  %v2288_v31 = vmul.f32 -1.442695, %v1617_v46 }
0x151b   :  { %v2499_v49 = vpop.eup %2498 }
0x151c   :  { %1663 = vrot.lane.b32.xlu1 %v2499_v49, %s2598_s23 }
0x1532   :  { %v1614_v29 = vpop.f32.mrf.mxu2 }
0x1533   :  { %v1618_v53 = vadd.f32 %v1614_v29, %v1241_v27 }
0x1535   :  { %2500 = vtanh.f32 %v1618_v53  ;;  %v2289_v58 = vmul.f32 -1.442695, %v1618_v53 }
0x1536   :  { %2502 = vpow2.f32 %v2288_v31 }
0x1537   :  { %2504 = vpow2.f32 %v2289_v58 }
0x153b   :  { %v2501_v30 = vpop.eup %2500 }
0x153c   :  { %1665 = vrot.lane.b32.xlu2 %v2501_v30, %s2598_s23  ;;  %v2503_v48 = vpop.eup %2502 }
0x153d   :  { %v1625_v52 = vadd.f32 1.0, %v2503_v48  ;;  %v2505_v55 = vpop.eup %2504 }
0x153e   :  { %v1626_v56 = vadd.f32 1.0, %v2505_v55 }
0x153f   :  { %2506 = vrcp.f32 %v1625_v52  ;;  %v1638_v33 = vand.u32 2147483648, %v1625_v52  ;;  %vm1632_vm13 = vweird.f32 %v1625_v52  ;;  %v1636_v62 = vand.u32 2147483647, %v1625_v52 }
0x1540   :  { %2508 = vrcp.f32 %v1626_v56  ;;  %v1653_v34 = vand.u32 2147483648, %v1626_v56  ;;  %vm1647_vm1 = vweird.f32 %v1626_v56  ;;  %v1651_v14 = vand.u32 2147483647, %v1626_v56 }
0x1541   :  { %v1639_v57 = vor.u32 1.1754944e-38, %v1638_v33  ;;  %vm1637_vm14 = vcmp.eq.f32.partialorder %v1636_v62, 8.507059e+37 }
0x1542   :  { %v1654_v6 = vor.u32 1.1754944e-38, %v1653_v34  ;;  %vm1652_vm3 = vcmp.eq.f32.partialorder %v1651_v14, 8.507059e+37 }
0x1545   :  { %v2507_v4 = vpop.eup %2506 }
0x1546   :  { %v1628_v10 = vmul.f32 %v2507_v4, %v1625_v52  ;;  %v2509_v13 = vpop.eup %2508  ;;  %vm1633_vm12 = vweird.f32 %v2507_v4 }
0x1547   :  { %v1643_v16 = vmul.f32 %v2509_v13, %v1626_v56  ;;  %vm1634_vm0 = vmor %vm1632_vm13, %vm1633_vm12  ;;  %vm1648_vm15 = vweird.f32 %v2509_v13 }
0x1548   :  { %v1629_v12 = vsub.f32 1.0, %v1628_v10  ;;  %vm1649_vm2 = vmor %vm1647_vm1, %vm1648_vm15 }
0x1549   :  { %v1644_v35 = vsub.f32 1.0, %v1643_v16 }
0x154a   :  { %v1630_v51 = vmul.f32 %v2507_v4, %v1629_v12 }
0x154b   :  { %v1645_v7 = vmul.f32 %v2509_v13, %v1644_v35 }
0x154c   :  { %v1631_v25 = vadd.f32 %v2507_v4, %v1630_v51 }
0x154d   :  { %v1646_v32 = vadd.f32 %v2509_v13, %v1645_v7 }
0x154e   :  { %v1635_v60 = vsel %vm1634_vm0, %v2507_v4, %v1631_v25 }
0x154f   :  { %v1640_v23 = vsel %vm1637_vm14, %v1639_v57, %v1635_v60  ;;  %v1650_v59 = vsel %vm1649_vm2, %v2509_v13, %v1646_v32 }
0x1550   :  { %v1655_v9 = vsel %vm1652_vm3, %v1654_v6, %v1650_v59  ;;  %v1659_v0 = vmul.f32 %v1640_v23, %v3131_v28 }
0x1551   :  { %v1660_v42 = vmul.f32 %v1655_v9, %v3139_v36 }
0x158e   :  { %v1664_v21 = vpop.permute.xlu1 %1663 }
0x158f   :  { %v1669_v24 = vmul.f32 %v1664_v21, %v1640_v23 }
0x1591   :  { %1673 = vrot.lane.b32.xlu0 %v1669_v24, %s2598_s23 }
0x1596   :  { %v1666_v37 = vpop.permute.xlu2 %1665 }
0x1597   :  { %v1670_v39 = vmul.f32 %v1666_v37, %v1655_v9 }
0x1599   :  { %1675 = vrot.lane.b32.xlu1 %v1670_v39, %s2598_s23 }
0x15a1   :  { %739 = vrot.lane.b32.xlu1 %v735_v63, %s2599_s28 }
0x1603   :  { %v1674_v5 = vpop.permute.xlu0 %1673 }
0x1604   :  { %v3172_v17 = vadd.f32 %v1674_v5, %v1659_v0 }
0x1606   :  { %2510 = vtanh.f32 %v3172_v17 }
0x160b   :  { %v1676_v44 = vpop.permute.xlu1 %1675 }
0x160c   :  { %v2511_v3 = vpop.eup %2510  ;;  %v3176_v2 = vadd.f32 %v1676_v44, %v1660_v42 }
0x160d   :  { %1685 = vrot.lane.b32.xlu2 %v2511_v3, %s2598_s23 }
0x160e   :  { %2512 = vtanh.f32 %v3176_v2 }
0x1613   :  { %v740_v19 = vpop.permute.xlu1 %739 }
0x1614   :  { %v2513_v28 = vpop.eup %2512  ;;  %745 = vst.msk [vmem:[#allocation2 + $0x20] sm:$0xf] %vm260_vm6, %v740_v19 }
0x1615   :  { %741 = vrot.lane.b32.xlu2 %v736_v11, %s2599_s28  ;;  %1687 = vrot.lane.b32.xlu0 %v2513_v28, %s2598_s23  ;;  %v856_v28 = vpack.c.bf16 %v2937_v22, %v2937_v22 }
0x1667   :  { %v1686_v36 = vpop.permute.xlu2 %1685 }
0x1668   :  { %v3185_v50 = vmul.f32 %v1686_v36, %v1640_v23 }
0x166a   :  { %v1693_v18 = vmax.f32 %v3146_v8, %v3185_v50  ;;  %1697 = vrot.lane.b32.xlu0 %v3185_v50, %s2599_s28 }
0x166f   :  { %v742_v46 = vpop.permute.xlu2 %741 }
0x1670   :  { %746 = vst.msk [vmem:[#allocation2 + $0x24] sm:$0xf] %vm260_vm6, %v742_v46 }
0x1677   :  { %v2320_v15 = vld [vmem:[#allocation2 + $0x20] sm:$0xff] }
0x1678   :  { %2272 = vmatmul.msk.bf16.gmra.mxu3 %vm147_vm9, %v2320_v15 }
0x1687   :  { %v1688_v49 = vpop.permute.xlu0 %1687 }
0x1688   :  { %v3193_v45 = vmul.f32 %v1688_v49, %v1655_v9 }
0x168a   :  { %v1694_v27 = vmax.f32 %v3152_v43, %v3193_v45  ;;  %1699 = vrot.lane.b32.xlu1 %v3193_v45, %s2599_s28 }
0x16dc   :  { %v1698_v29 = vpop.permute.xlu0 %1697 }
0x16dd   :  { %2290 = vmatmul.msk.f32.vlgmr.msrb.gmra.mxu1 %vm147_vm9, %v1698_v29  ;;  %v857_v29 = vpack.c.bf16 %v2943_v26, %v2943_v26 }
0x16fb   :  { %v1243_v30 = vpop.f32.mrf.mxu3 }
0x16fc   :  { %v1700_v53 = vpop.permute.xlu1 %1699  ;;  %v1244_v31 = vadd.f32 %v3000_v40, %v1243_v30 }
0x16fd   :  { %2291 = vmatmul.msk.f32.gmra.mxu1 %vm147_vm9, %v1700_v53 }
0x1703   :  { %v1245_v55 = vpop.f32.mrf.mxu3 }
0x1704   :  { %v1246_v56 = vadd.f32 %v3000_v40, %v1245_v55 }
0x175a   :  { %v1722_v58 = vpop.f32.mrf.mxu1 }
0x175b   :  { %v1728_v48 = vadd.f32 %v1722_v58, %v1244_v31 }
0x175d   :  { %2514 = vtanh.f32 %v1728_v48  ;;  %v2292_v13 = vmul.f32 -1.442695, %v1728_v48 }
0x1763   :  { %v2515_v52 = vpop.eup %2514 }
0x1764   :  { %1774 = vrot.lane.b32.xlu2 %v2515_v52, %s2598_s23 }
0x177a   :  { %v1725_v4 = vpop.f32.mrf.mxu1 }
0x177b   :  { %v1729_v10 = vadd.f32 %v1725_v4, %v1246_v56 }
0x177d   :  { %2516 = vtanh.f32 %v1729_v10  ;;  %v2293_v34 = vmul.f32 -1.442695, %v1729_v10  ;;  %v3243_v10 = vld [vmem:[%s3378_s6] ss:$0 sm:$0xff] }
0x177e   :  { %2518 = vpow2.f32 %v2292_v13 }
0x1783   :  { %v2517_v12 = vpop.eup %2516 }
0x1784   :  { %1776 = vrot.lane.b32.xlu0 %v2517_v12, %s2598_s23  ;;  %v2519_v51 = vpop.eup %2518 }
0x1785   :  { %v1736_v16 = vadd.f32 1.0, %v2519_v51 }
0x1787   :  { %2520 = vrcp.f32 %v1736_v16  ;;  %v1749_v7 = vand.u32 2147483648, %v1736_v16  ;;  %vm1743_vm5 = vweird.f32 %v1736_v16  ;;  %v1747_v40 = vand.u32 2147483647, %v1736_v16 }
0x1788   :  { %2522 = vpow2.f32 %v2293_v34 }
0x1789   :  { %v1750_v21 = vor.u32 1.1754944e-38, %v1749_v7  ;;  %vm1748_vm8 = vcmp.eq.f32.partialorder %v1747_v40, 8.507059e+37 }
0x178d   :  { %v2521_v25 = vpop.eup %2520 }
0x178e   :  { %v1739_v35 = vmul.f32 %v2521_v25, %v1736_v16  ;;  %vm1744_vm4 = vweird.f32 %v2521_v25  ;;  %v2523_v14 = vpop.eup %2522 }
0x178f   :  { %vm1745_vm7 = vmor %vm1743_vm5, %vm1744_vm4  ;;  %v1737_v59 = vadd.f32 1.0, %v2523_v14 }
0x1790   :  { %v1740_v33 = vsub.f32 1.0, %v1739_v35 }
0x1791   :  { %2524 = vrcp.f32 %v1737_v59  ;;  %v1764_v0 = vand.u32 2147483648, %v1737_v59  ;;  %vm1758_vm11 = vweird.f32 %v1737_v59  ;;  %v1762_v5 = vand.u32 2147483647, %v1737_v59 }
0x1792   :  { %v1741_v62 = vmul.f32 %v2521_v25, %v1740_v33 }
0x1793   :  { %v1765_v44 = vor.u32 1.1754944e-38, %v1764_v0  ;;  %vm1763_vm13 = vcmp.eq.f32.partialorder %v1762_v5, 8.507059e+37 }
0x1794   :  { %v1742_v60 = vadd.f32 %v2521_v25, %v1741_v62 }
0x1796   :  { %v1746_v57 = vsel %vm1745_vm7, %v2521_v25, %v1742_v60 }
0x1797   :  { %v1751_v24 = vsel %vm1748_vm8, %v1750_v21, %v1746_v57  ;;  %v2525_v6 = vpop.eup %2524 }
0x1798   :  { %v1754_v37 = vmul.f32 %v2525_v6, %v1737_v59  ;;  %vm1759_vm10 = vweird.f32 %v2525_v6  ;;  %v1770_v36 = vmul.f32 %v1751_v24, %v3172_v17 }
0x1799   :  { %vm1760_vm12 = vmor %vm1758_vm11, %vm1759_vm10 }
0x179a   :  { %v1755_v9 = vsub.f32 1.0, %v1754_v37 }
0x179c   :  { %v1756_v39 = vmul.f32 %v2525_v6, %v1755_v9 }
0x179e   :  { %v1757_v63 = vadd.f32 %v2525_v6, %v1756_v39 }
0x17a0   :  { %v1761_v42 = vsel %vm1760_vm12, %v2525_v6, %v1757_v63 }
0x17a1   :  { %v1766_v11 = vsel %vm1763_vm13, %v1765_v44, %v1761_v42 }
0x17a2   :  { %v1771_v53 = vmul.f32 %v1766_v11, %v3176_v2 }
0x17be   :  { %v1775_v23 = vpop.permute.xlu2 %1774 }
0x17bf   :  { %v1780_v32 = vmul.f32 %v1775_v23, %v1751_v24 }
0x17c1   :  { %1784 = vrot.lane.b32.xlu1 %v1780_v32, %s2598_s23 }
0x17f6   :  { %v1777_v3 = vpop.permute.xlu0 %1776 }
0x17f7   :  { %v1781_v19 = vmul.f32 %v1777_v3, %v1766_v11 }
0x17f9   :  { %1786 = vrot.lane.b32.xlu2 %v1781_v19, %s2598_s23 }
0x1801   :  { %860 = vrot.lane.b32.xlu2 %v856_v28, %s2599_s28 }
0x1833   :  { %v1785_v46 = vpop.permute.xlu1 %1784 }
0x1834   :  { %v3211_v15 = vadd.f32 %v1785_v46, %v1770_v36 }
0x1836   :  { %2526 = vtanh.f32 %v3211_v15 }
0x183c   :  { %v2527_v49 = vpop.eup %2526 }
0x183d   :  { %1796 = vrot.lane.b32.xlu0 %v2527_v49, %s2598_s23 }
0x1845   :  { %862 = vrot.lane.b32.xlu0 %v857_v29, %s2599_s28 }
0x1853   :  { %v1787_v22 = vpop.permute.xlu2 %1786 }
0x1854   :  { %v3219_v30 = vadd.f32 %v1787_v22, %v1771_v53  ;;  %v977_v53 = vpack.c.bf16 %v3044_v61, %v3044_v61 }
0x1856   :  { %2528 = vtanh.f32 %v3219_v30 }
0x185b   :  { %v861_v17 = vpop.permute.xlu2 %860 }
0x185c   :  { %v2529_v31 = vpop.eup %2528  ;;  %866 = vst.msk [vmem:[#allocation2 + $0x28] sm:$0xf] %vm260_vm6, %v861_v17 }
0x185d   :  { %1798 = vrot.lane.b32.xlu1 %v2529_v31, %s2598_s23 }
0x18af   :  { %v1797_v58 = vpop.permute.xlu0 %1796 }
0x18b0   :  { %v1802_v48 = vmul.f32 %v1797_v58, %v1751_v24 }
0x18b2   :  { %v3227_v26 = vmax.f32 %v1693_v18, %v1802_v48  ;;  %1808 = vrot.lane.b32.xlu1 %v1802_v48, %s2599_s28  ;;  %v978_v48 = vpack.c.bf16 %v3048_v41, %v3048_v41  ;;  %v2226_v41 = vmul.f32 -1.442695, %v3078_v47 }
0x18b7   :  { %v863_v2 = vpop.permute.xlu0 %862 }
0x18b8   :  { %867 = vst.msk [vmem:[#allocation2 + $0x2c] sm:$0xf] %vm260_vm6, %v863_v2 }
0x18bf   :  { %v2321_v52 = vld [vmem:[#allocation2 + $0x28] sm:$0xff] }
0x18c0   :  { %2273 = vmatmul.msk.bf16.gmra.mxu3 %vm147_vm9, %v2321_v52 }
0x18cf   :  { %v1799_v55 = vpop.permute.xlu1 %1798 }
0x18d0   :  { %v1803_v56 = vmul.f32 %v1799_v55, %v1766_v11 }
0x18d2   :  { %v3235_v4 = vmax.f32 %v1694_v27, %v1803_v56  ;;  %1810 = vrot.lane.b32.xlu2 %v1803_v56, %s2599_s28 }
0x1924   :  { %v1809_v8 = vpop.permute.xlu1 %1808 }
0x1925   :  { %2294 = vmatmul.msk.f32.vlgmr.msra.gmra.mxu2 %vm147_vm9, %v1809_v8 }
0x192c   :  { %v1811_v50 = vpop.permute.xlu2 %1810 }
0x192d   :  { %2295 = vmatmul.msk.f32.gmra.mxu2 %vm147_vm9, %v1811_v50 }
0x1943   :  { %v1248_v18 = vpop.f32.mrf.mxu3 }
0x1944   :  { %v1249_v12 = vadd.f32 %v3243_v10, %v1248_v18 }
0x194b   :  { %v1250_v45 = vpop.f32.mrf.mxu3 }
0x194c   :  { %v1251_v27 = vadd.f32 %v3243_v10, %v1250_v45 }
0x19a8   :  { %v1833_v13 = vpop.f32.mrf.mxu2 }
0x19a9   :  { %v1839_v43 = vadd.f32 %v1833_v13, %v1249_v12 }
0x19ab   :  { %2530 = vtanh.f32 %v1839_v43  ;;  %v2296_v33 = vmul.f32 -1.442695, %v1839_v43 }
0x19b0   :  { %v1836_v51 = vpop.f32.mrf.mxu2 }
0x19b1   :  { %v2531_v16 = vpop.eup %2530  ;;  %v1840_v25 = vadd.f32 %v1836_v51, %v1251_v27 }
0x19b2   :  { %1885 = vrot.lane.b32.xlu0 %v2531_v16, %s2598_s23 }
0x19b3   :  { %2532 = vtanh.f32 %v1840_v25  ;;  %v2297_v62 = vmul.f32 -1.442695, %v1840_v25 }
0x19b4   :  { %2534 = vpow2.f32 %v2296_v33 }
0x19b5   :  { %2536 = vpow2.f32 %v2297_v62 }
0x19b9   :  { %v2533_v35 = vpop.eup %2532 }
0x19ba   :  { %1887 = vrot.lane.b32.xlu1 %v2533_v35, %s2598_s23  ;;  %v2535_v60 = vpop.eup %2534 }
0x19bb   :  { %v1847_v7 = vadd.f32 1.0, %v2535_v60  ;;  %v2537_v40 = vpop.eup %2536 }
0x19bc   :  { %v1848_v57 = vadd.f32 1.0, %v2537_v40 }
0x19bd   :  { %2538 = vrcp.f32 %v1847_v7  ;;  %v1860_v37 = vand.u32 2147483648, %v1847_v7  ;;  %vm1854_vm14 = vweird.f32 %v1847_v7  ;;  %v1858_v9 = vand.u32 2147483647, %v1847_v7 }
0x19be   :  { %2540 = vrcp.f32 %v1848_v57  ;;  %v1875_v11 = vand.u32 2147483648, %v1848_v57  ;;  %vm1869_vm3 = vweird.f32 %v1848_v57  ;;  %v1873_v19 = vand.u32 2147483647, %v1848_v57 }
0x19bf   :  { %v1861_v0 = vor.u32 1.1754944e-38, %v1860_v37  ;;  %vm1859_vm1 = vcmp.eq.f32.partialorder %v1858_v9, 8.507059e+37 }
0x19c0   :  { %v1876_v36 = vor.u32 1.1754944e-38, %v1875_v11  ;;  %vm1874_vm5 = vcmp.eq.f32.partialorder %v1873_v19, 8.507059e+37 }
0x19c3   :  { %v2539_v21 = vpop.eup %2538 }
0x19c4   :  { %v1850_v23 = vmul.f32 %v2539_v21, %v1847_v7  ;;  %v2541_v32 = vpop.eup %2540  ;;  %vm1855_vm0 = vweird.f32 %v2539_v21 }
0x19c5   :  { %v1865_v14 = vmul.f32 %v2541_v32, %v1848_v57  ;;  %vm1856_vm15 = vmor %vm1854_vm14, %vm1855_vm0  ;;  %vm1870_vm2 = vweird.f32 %v2541_v32 }
0x19c6   :  { %v1851_v24 = vsub.f32 1.0, %v1850_v23  ;;  %vm1871_vm4 = vmor %vm1869_vm3, %vm1870_vm2 }
0x19c7   :  { %v1866_v6 = vsub.f32 1.0, %v1865_v14 }
0x19c8   :  { %v1852_v34 = vmul.f32 %v2539_v21, %v1851_v24 }
0x19c9   :  { %v1867_v63 = vmul.f32 %v2541_v32, %v1866_v6 }
0x19ca   :  { %v1853_v59 = vadd.f32 %v2539_v21, %v1852_v34 }
0x19cb   :  { %v1868_v3 = vadd.f32 %v2541_v32, %v1867_v63 }
0x19cc   :  { %v1857_v39 = vsel %vm1856_vm15, %v2539_v21, %v1853_v59 }
0x19cd   :  { %v1862_v42 = vsel %vm1859_vm1, %v1861_v0, %v1857_v39  ;;  %v1872_v28 = vsel %vm1871_vm4, %v2541_v32, %v1868_v3 }
0x19ce   :  { %v1877_v49 = vsel %vm1874_vm5, %v1876_v36, %v1872_v28  ;;  %v1881_v22 = vmul.f32 %v1862_v42, %v3211_v15 }
0x19cf   :  { %v1882_v15 = vmul.f32 %v1877_v49, %v3219_v30  ;;  %v2596_v30 = vld [vmem:[%s3376_s3] ss:$0 sm:$0xff] }
0x19d0   :  { %v145_v13 = vadd.f32 %v2596_v30, %v2906_v20 }
0x19d2   :  { %v1023_v43 = vadd.f32 %v3080_v54, %v145_v13 }
0x19d4   :  { %v2227_v59 = vmul.f32 -1.442695, %v1023_v43 }
0x1a24   :  { %v1886_v5 = vpop.permute.xlu0 %1885 }
0x1a25   :  { %v1891_v44 = vmul.f32 %v1886_v5, %v1862_v42 }
0x1a27   :  { %1895 = vrot.lane.b32.xlu2 %v1891_v44, %s2598_s23 }
0x1a2c   :  { %v1888_v46 = vpop.permute.xlu1 %1887 }
0x1a2d   :  { %v1892_v29 = vmul.f32 %v1888_v46, %v1877_v49 }
0x1a2f   :  { %1897 = vrot.lane.b32.xlu0 %v1892_v29, %s2598_s23 }
0x1a37   :  { %981 = vrot.lane.b32.xlu0 %v977_v53, %s2599_s28 }
0x1a81   :  { %v1896_v17 = vpop.permute.xlu2 %1895 }
0x1a82   :  { %v3255_v31 = vadd.f32 %v1896_v17, %v1881_v22 }
0x1a84   :  { %2542 = vtanh.f32 %v3255_v31 }
0x1a85   :  { %2544 = vtanh.f32 %v3078_v47 }
0x1a8a   :  { %v2543_v58 = vpop.eup %2542 }
0x1a8b   :  { %1907 = vrot.lane.b32.xlu1 %v2543_v58, %s2598_s23  ;;  %v2545_v61 = vpop.eup %2544 }
0x1a93   :  { %983 = vrot.lane.b32.xlu1 %v978_v48, %s2599_s28 }
0x1a9b   :  { %1068 = vrot.lane.b32.xlu1 %v2545_v61, %s2598_s23 }
0x1aa1   :  { %v1898_v2 = vpop.permute.xlu0 %1897 }
0x1aa2   :  { %v3265_v52 = vadd.f32 %v1898_v2, %v1882_v15 }
0x1aa4   :  { %2546 = vtanh.f32 %v3265_v52 }
0x1aa5   :  { %2548 = vpow2.f32 %v2226_v41 }
0x1aa9   :  { %v982_v55 = vpop.permute.xlu0 %981 }
0x1aaa   :  { %v2547_v56 = vpop.eup %2546  ;;  %987 = vst.msk [vmem:[#allocation2 + $0x30] sm:$0xf] %vm260_vm6, %v982_v55 }
0x1aab   :  { %1909 = vrot.lane.b32.xlu2 %v2547_v56, %s2598_s23  ;;  %v2549_v8 = vpop.eup %2548 }
0x1aac   :  { %v1030_v50 = vadd.f32 1.0, %v2549_v8 }
0x1aae   :  { %2550 = vrcp.f32 %v1030_v50  ;;  %v1043_v62 = vand.u32 2147483648, %v1030_v50  ;;  %vm1037_vm8 = vweird.f32 %v1030_v50  ;;  %v1041_v7 = vand.u32 2147483647, %v1030_v50 }
0x1aaf   :  { %2552 = vtanh.f32 %v1023_v43 }
0x1ab0   :  { %v1044_v57 = vor.u32 1.1754944e-38, %v1043_v62  ;;  %vm1042_vm11 = vcmp.eq.f32.partialorder %v1041_v7, 8.507059e+37  ;;  %2554 = vpow2.f32 %v2227_v59 }
0x1ab4   :  { %v2551_v18 = vpop.eup %2550 }
0x1ab5   :  { %v1033_v12 = vmul.f32 %v2551_v18, %v1030_v50  ;;  %vm1038_vm7 = vweird.f32 %v2551_v18  ;;  %v2553_v54 = vpop.eup %2552 }
0x1ab6   :  { %vm1039_vm10 = vmor %vm1037_vm8, %vm1038_vm7  ;;  %v2555_v6 = vpop.eup %2554 }
0x1ab7   :  { %v1034_v51 = vsub.f32 1.0, %v1033_v12  ;;  %v1031_v37 = vadd.f32 1.0, %v2555_v6 }
0x1ab9   :  { %v1035_v16 = vmul.f32 %v2551_v18, %v1034_v51  ;;  %2556 = vrcp.f32 %v1031_v37  ;;  %v1058_v36 = vand.u32 2147483648, %v1031_v37  ;;  %vm1052_vm13 = vweird.f32 %v1031_v37 }
0x1aba   :  { %v1056_v46 = vand.u32 2147483647, %v1031_v37 }
0x1abb   :  { %v1036_v20 = vadd.f32 %v2551_v18, %v1035_v16  ;;  %v1059_v53 = vor.u32 1.1754944e-38, %v1058_v36 }
0x1abc   :  { %vm1057_vm14 = vcmp.eq.f32.partialorder %v1056_v46, 8.507059e+37 }
0x1abd   :  { %v1040_v40 = vsel %vm1039_vm10, %v2551_v18, %v1036_v20 }
0x1abe   :  { %v3290_v21 = vsel %vm1042_vm11, %v1044_v57, %v1040_v40 }
0x1abf   :  { %v2557_v9 = vpop.eup %2556  ;;  %v1064_v22 = vmul.f32 %v3290_v21, %v3019_v1 }
0x1ac0   :  { %v1048_v39 = vmul.f32 %v2557_v9, %v1031_v37  ;;  %vm1053_vm12 = vweird.f32 %v2557_v9 }
0x1ac1   :  { %vm1054_vm0 = vmor %vm1052_vm13, %vm1053_vm12 }
0x1ac2   :  { %v1049_v5 = vsub.f32 1.0, %v1048_v39 }
0x1ac4   :  { %v1050_v11 = vmul.f32 %v2557_v9, %v1049_v5 }
0x1ac6   :  { %v1051_v19 = vadd.f32 %v2557_v9, %v1050_v11 }
0x1afd   :  { %v1908_v45 = vpop.permute.xlu1 %1907 }
0x1afe   :  { %v3276_v27 = vmul.f32 %v1908_v45, %v1862_v42 }
0x1b00   :  { %v1915_v47 = vmax.f32 %v3227_v26, %v3276_v27  ;;  %1919 = vrot.lane.b32.xlu2 %v3276_v27, %s2599_s28 }
0x1b05   :  { %v984_v25 = vpop.permute.xlu1 %983  ;;  %v1910_v35 = vpop.permute.xlu2 %1909 }
0x1b06   :  { %988 = vst.msk [vmem:[#allocation2 + $0x34] sm:$0xf] %vm260_vm6, %v984_v25  ;;  %v3283_v33 = vmul.f32 %v1910_v35, %v1877_v49  ;;  %v1055_v49 = vsel %vm1054_vm0, %v2557_v9, %v1051_v19 }
0x1b07   :  { %v3301_v17 = vsel %vm1057_vm14, %v1059_v53, %v1055_v49 }
0x1b08   :  { %v1916_v60 = vmax.f32 %v3235_v4, %v3283_v33  ;;  %1921 = vrot.lane.b32.xlu0 %v3283_v33, %s2599_s28  ;;  %1070 = vrot.lane.b32.xlu2 %v2553_v54, %s2598_s23  ;;  %v1065_v57 = vmul.f32 %v3301_v17, %v3034_v38 }
0x1b0d   :  { %v1069_v23 = vpop.permute.xlu1 %1068  ;;  %v2322_v24 = vld [vmem:[#allocation2 + $0x30] sm:$0xff] }
0x1b0e   :  { %v1074_v32 = vmul.f32 %v1069_v23, %v3290_v21  ;;  %2274 = vmatmul.msk.bf16.gmra.mxu3 %vm147_vm9, %v2322_v24 }
0x1b10   :  { %1078 = vrot.lane.b32.xlu2 %v1074_v32, %s2598_s23 }
0x1b5a   :  { %v1920_v34 = vpop.permute.xlu2 %1919 }
0x1b5b   :  { %2298 = vmatmul.msk.f32.vlgmr.msra.gmra.mxu1 %vm147_vm9, %v1920_v34 }
0x1b62   :  { %v1071_v3 = vpop.permute.xlu2 %1070 }
0x1b63   :  { %v1075_v48 = vmul.f32 %v1071_v3, %v3301_v17 }
0x1b6a   :  { %v1079_v29 = vpop.permute.xlu2 %1078 }
0x1b6b   :  { %v1084_v58 = vadd.f32 %v1079_v29, %v1064_v22 }
0x1b7a   :  { %v1922_v14 = vpop.permute.xlu0 %1921 }
0x1b7b   :  { %2299 = vmatmul.msk.f32.gmra.mxu1 %vm147_vm9, %v1922_v14 }
0x1b91   :  { %v1253_v63 = vpop.f32.mrf.mxu3 }
0x1b92   :  { %v1254_v0 = vadd.f32 %v3243_v10, %v1253_v63 }
0x1b99   :  { %v1255_v15 = vpop.f32.mrf.mxu3 }
0x1b9a   :  { %v1256_v2 = vadd.f32 %v3243_v10, %v1255_v15 }
0x1bd8   :  { %v1944_v42 = vpop.f32.mrf.mxu1 }
0x1bd9   :  { %v1950_v44 = vadd.f32 %v1944_v42, %v1254_v0 }
0x1bdb   :  { %2558 = vtanh.f32 %v1950_v44  ;;  %v2300_v1 = vmul.f32 -1.442695, %v1950_v44 }
0x1bdc   :  { %2560 = vtanh.f32 %v1084_v58 }
0x1be1   :  { %v2559_v28 = vpop.eup %2558 }
0x1be2   :  { %1996 = vrot.lane.b32.xlu0 %v2559_v28, %s2598_s23  ;;  %v2561_v61 = vpop.eup %2560 }
0x1bea   :  { %1080 = vrot.lane.b32.xlu0 %v1075_v48, %s2598_s23 }
0x1bf2   :  { %1090 = vrot.lane.b32.xlu0 %v2561_v61, %s2598_s23 }
0x1bf8   :  { %v1947_v55 = vpop.f32.mrf.mxu1 }
0x1bf9   :  { %v1951_v56 = vadd.f32 %v1947_v55, %v1256_v2 }
0x1bfb   :  { %2562 = vtanh.f32 %v1951_v56  ;;  %v2301_v13 = vmul.f32 -1.442695, %v1951_v56 }
0x1bfc   :  { %2564 = vpow2.f32 %v2300_v1 }
0x1c01   :  { %v2563_v41 = vpop.eup %2562 }
0x1c02   :  { %1998 = vrot.lane.b32.xlu1 %v2563_v41, %s2598_s23  ;;  %v2565_v8 = vpop.eup %2564 }
0x1c03   :  { %v1958_v50 = vadd.f32 1.0, %v2565_v8 }
0x1c05   :  { %2566 = vrcp.f32 %v1958_v50  ;;  %v1971_v51 = vand.u32 2147483648, %v1958_v50  ;;  %vm1965_vm1 = vweird.f32 %v1958_v50  ;;  %v1969_v16 = vand.u32 2147483647, %v1958_v50 }
0x1c06   :  { %2568 = vpow2.f32 %v2301_v13 }
0x1c07   :  { %v1972_v20 = vor.u32 1.1754944e-38, %v1971_v51  ;;  %vm1970_vm3 = vcmp.eq.f32.partialorder %v1969_v16, 8.507059e+37 }
0x1c0b   :  { %v2567_v18 = vpop.eup %2566 }
0x1c0c   :  { %v1961_v12 = vmul.f32 %v2567_v18, %v1958_v50  ;;  %vm1966_vm15 = vweird.f32 %v2567_v18  ;;  %v2569_v25 = vpop.eup %2568 }
0x1c0d   :  { %vm1967_vm2 = vmor %vm1965_vm1, %vm1966_vm15  ;;  %v1959_v54 = vadd.f32 1.0, %v2569_v25 }
0x1c0e   :  { %v1962_v30 = vsub.f32 1.0, %v1961_v12 }
0x1c0f   :  { %2570 = vrcp.f32 %v1959_v54  ;;  %v1986_v0 = vand.u32 2147483648, %v1959_v54  ;;  %vm1980_vm5 = vweird.f32 %v1959_v54  ;;  %v1984_v38 = vand.u32 2147483647, %v1959_v54 }
0x1c10   :  { %v1963_v43 = vmul.f32 %v2567_v18, %v1962_v30 }
0x1c11   :  { %v1987_v42 = vor.u32 1.1754944e-38, %v1986_v0  ;;  %vm1985_vm8 = vcmp.eq.f32.partialorder %v1984_v38, 8.507059e+37 }
0x1c12   :  { %v1964_v45 = vadd.f32 %v2567_v18, %v1963_v43 }
0x1c14   :  { %v1968_v35 = vsel %vm1967_vm2, %v2567_v18, %v1964_v45 }
0x1c15   :  { %v1973_v7 = vsel %vm1970_vm3, %v1972_v20, %v1968_v35  ;;  %v2571_v32 = vpop.eup %2570 }
0x1c16   :  { %v1976_v34 = vmul.f32 %v2571_v32, %v1959_v54  ;;  %vm1981_vm4 = vweird.f32 %v2571_v32 }
0x1c17   :  { %vm1982_vm7 = vmor %vm1980_vm5, %vm1981_vm4 }
0x1c18   :  { %v1977_v6 = vsub.f32 1.0, %v1976_v34 }
0x1c1a   :  { %v1978_v9 = vmul.f32 %v2571_v32, %v1977_v6 }
0x1c1c   :  { %v1979_v63 = vadd.f32 %v2571_v32, %v1978_v9 }
0x1c1e   :  { %v1983_v5 = vsel %vm1982_vm7, %v2571_v32, %v1979_v63 }
0x1c1f   :  { %v1988_v3 = vsel %vm1985_vm8, %v1987_v42, %v1983_v5 }
0x1c20   :  { %v1993_v36 = vmul.f32 %v1988_v3, %v3265_v52 }
0x1c54   :  { %v1997_v62 = vpop.permute.xlu0 %1996 }
0x1c55   :  { %v2002_v40 = vmul.f32 %v1997_v62, %v1973_v7 }
0x1c57   :  { %2006 = vrot.lane.b32.xlu1 %v2002_v40, %s2598_s23 }
0x1c5c   :  { %v1081_v23 = vpop.permute.xlu0 %1080 }
0x1c5d   :  { %v1085_v24 = vadd.f32 %v1081_v23, %v1065_v57 }
0x1c5f   :  { %2572 = vtanh.f32 %v1085_v24 }
0x1c64   :  { %v1091_v59 = vpop.permute.xlu0 %1090 }
0x1c65   :  { %v2573_v14 = vpop.eup %2572  ;;  %v1096_v37 = vmul.f32 %v1091_v59, %v3290_v21  ;;  %v1992_v21 = vmul.f32 %v1973_v7, %v3255_v31 }
0x1c66   :  { %1092 = vrot.lane.b32.xlu1 %v2573_v14, %s2598_s23 }
0x1c67   :  { %v1098_v39 = vpack.c.bf16 %v1096_v37, %v1096_v37 }
0x1c6e   :  { %1102 = vrot.lane.b32.xlu1 %v1098_v39, %s2599_s28 }
0x1c74   :  { %v1999_v44 = vpop.permute.xlu1 %1998 }
0x1c75   :  { %v2003_v11 = vmul.f32 %v1999_v44, %v1988_v3 }
0x1c77   :  { %2008 = vrot.lane.b32.xlu2 %v2003_v11, %s2598_s23 }
0x1cc9   :  { %v2007_v19 = vpop.permute.xlu1 %2006 }
0x1cca   :  { %v3316_v28 = vadd.f32 %v2007_v19, %v1992_v21 }
0x1ccc   :  { %2574 = vtanh.f32 %v3316_v28 }
0x1cd1   :  { %v2009_v46 = vpop.permute.xlu2 %2008 }
0x1cd2   :  { %v2575_v49 = vpop.eup %2574  ;;  %v3320_v29 = vadd.f32 %v2009_v46, %v1993_v36 }
0x1cd3   :  { %2018 = vrot.lane.b32.xlu2 %v2575_v49, %s2598_s23 }
0x1cd4   :  { %2576 = vtanh.f32 %v3320_v29 }
0x1cd8   :  { %v1093_v53 = vpop.permute.xlu1 %1092 }
0x1cd9   :  { %v1097_v22 = vmul.f32 %v1093_v53, %v3301_v17 }
0x1cda   :  { %v2577_v58 = vpop.eup %2576 }
0x1cdb   :  { %v1099_v31 = vpack.c.bf16 %v1097_v22, %v1097_v22  ;;  %2020 = vrot.lane.b32.xlu0 %v2577_v58, %s2598_s23  ;;  %v2327_v22 = vld [vmem:[%s3381_s7 + $0x8] sm:$0xff] }
0x1cdc   :  { %2172 = vmatpush.bf16.msrb.mxu1 %v2327_v22 }
0x1cdd   :  { %1104 = vrot.lane.b32.xlu2 %v1099_v31, %s2599_s28 }
0x1ce0   :  { %v1103_v48 = vpop.permute.xlu1 %1102 }
0x1ce1   :  { %1108 = vst.msk [vmem:[#allocation2 + $0x38] sm:$0xf] %vm260_vm6, %v1103_v48 }
0x1d2d   :  { %v2019_v52 = vpop.permute.xlu2 %2018 }
0x1d2e   :  { %v2024_v61 = vmul.f32 %v2019_v52, %v1973_v7 }
0x1d30   :  { %v3331_v15 = vmax.f32 %v1915_v47, %v2024_v61  ;;  %2030 = vrot.lane.b32.xlu0 %v2024_v61, %s2599_s28 }
0x1d37   :  { %v1105_v2 = vpop.permute.xlu2 %1104 }
0x1d38   :  { %1109 = vst.msk [vmem:[#allocation2 + $0x3c] sm:$0xf] %vm260_vm6, %v1105_v2 }
0x1d3f   :  { %v2323_v17 = vld [vmem:[#allocation2 + $0x38] sm:$0xff] }
0x1d40   :  { %2275 = vmatmul.msk.bf16.gmra.mxu3 %vm147_vm9, %v2323_v17 }
0x1d4d   :  { %v2021_v55 = vpop.permute.xlu0 %2020 }
0x1d4e   :  { %v2025_v56 = vmul.f32 %v2021_v55, %v1988_v3  ;;  %v2337_v55 = vld [vmem:[%s3380_s8] ss:$0 sm:$0xff] }
0x1d50   :  { %v3339_v41 = vmax.f32 %v1916_v60, %v2025_v56  ;;  %2032 = vrot.lane.b32.xlu1 %v2025_v56, %s2599_s28 }
0x1da2   :  { %v2031_v26 = vpop.permute.xlu0 %2030 }
0x1da3   :  { %2302 = vmatmul.msk.f32.vlgmr.msrb.gmra.mxu2 %vm147_vm9, %v2031_v26 }
0x1dc2   :  { %v2033_v27 = vpop.permute.xlu1 %2032 }
0x1dc3   :  { %2303 = vmatmul.msk.f32.gmra.mxu2 %vm147_vm9, %v2033_v27  ;;  %v1258_v47 = vpop.f32.mrf.mxu3 }
0x1dc4   :  { %v1259_v1 = vadd.f32 %v3243_v10, %v1258_v47 }
0x1dcb   :  { %v1260_v4 = vpop.f32.mrf.mxu3 }
0x1dcc   :  { %v1261_v33 = vadd.f32 %v3243_v10, %v1260_v4 }
0x1e26   :  { %v2055_v8 = vpop.f32.mrf.mxu2 }
0x1e27   :  { %v2061_v50 = vadd.f32 %v2055_v8, %v1259_v1 }
0x1e29   :  { %2578 = vtanh.f32 %v2061_v50  ;;  %v2304_v13 = vmul.f32 -1.442695, %v2061_v50 }
0x1e2f   :  { %v2579_v18 = vpop.eup %2578 }
0x1e30   :  { %2107 = vrot.lane.b32.xlu2 %v2579_v18, %s2598_s23 }
0x1e46   :  { %v2058_v60 = vpop.f32.mrf.mxu2 }
0x1e47   :  { %v2062_v12 = vadd.f32 %v2058_v60, %v1261_v33 }
0x1e49   :  { %2580 = vtanh.f32 %v2062_v12  ;;  %v2305_v24 = vmul.f32 -1.442695, %v2062_v12 }
0x1e4a   :  { %2582 = vpow2.f32 %v2304_v13 }
0x1e4f   :  { %v2581_v30 = vpop.eup %2580 }
0x1e50   :  { %2109 = vrot.lane.b32.xlu0 %v2581_v30, %s2598_s23  ;;  %v2583_v43 = vpop.eup %2582 }
0x1e51   :  { %v2069_v45 = vadd.f32 1.0, %v2583_v43 }
0x1e53   :  { %2584 = vrcp.f32 %v2069_v45  ;;  %v2082_v54 = vand.u32 2147483648, %v2069_v45  ;;  %vm2076_vm10 = vweird.f32 %v2069_v45  ;;  %v2080_v10 = vand.u32 2147483647, %v2069_v45 }
0x1e54   :  { %2586 = vpow2.f32 %v2305_v24 }
0x1e55   :  { %v2083_v7 = vor.u32 1.1754944e-38, %v2082_v54  ;;  %vm2081_vm12 = vcmp.eq.f32.partialorder %v2080_v10, 8.507059e+37 }
0x1e59   :  { %v2585_v51 = vpop.eup %2584 }
0x1e5a   :  { %v2072_v16 = vmul.f32 %v2585_v51, %v2069_v45  ;;  %vm2077_vm6 = vweird.f32 %v2585_v51  ;;  %v2587_v32 = vpop.eup %2586 }
0x1e5b   :  { %vm2078_vm11 = vmor %vm2076_vm10, %vm2077_vm6  ;;  %v2070_v34 = vadd.f32 1.0, %v2587_v32 }
0x1e5c   :  { %v2073_v25 = vsub.f32 1.0, %v2072_v16 }
0x1e5d   :  { %2588 = vrcp.f32 %v2070_v34  ;;  %v2097_v39 = vand.u32 2147483648, %v2070_v34  ;;  %vm2091_vm0 = vweird.f32 %v2070_v34  ;;  %v2095_v63 = vand.u32 2147483647, %v2070_v34 }
0x1e5e   :  { %v2074_v35 = vmul.f32 %v2585_v51, %v2073_v25 }
0x1e5f   :  { %v2098_v38 = vor.u32 1.1754944e-38, %v2097_v39  ;;  %vm2096_vm15 = vcmp.eq.f32.partialorder %v2095_v63, 8.507059e+37 }
0x1e60   :  { %v2075_v20 = vadd.f32 %v2585_v51, %v2074_v35 }
0x1e62   :  { %v2079_v62 = vsel %vm2078_vm11, %v2585_v51, %v2075_v20 }
0x1e63   :  { %v2084_v57 = vsel %vm2081_vm12, %v2083_v7, %v2079_v62  ;;  %v2589_v14 = vpop.eup %2588 }
0x1e64   :  { %v2087_v59 = vmul.f32 %v2589_v14, %v2070_v34  ;;  %vm2092_vm13 = vweird.f32 %v2589_v14  ;;  %v2103_v3 = vmul.f32 %v2084_v57, %v3316_v28  ;;  %v2326_v28 = vld [vmem:[%s3381_s7] sm:$0xff] }
0x1e65   :  { %vm2093_vm14 = vmor %vm2091_vm0, %vm2092_vm13  ;;  %2173 = vmatpush.bf16.msrb.mxu1 %v2326_v28 }
0x1e66   :  { %v2088_v6 = vsub.f32 1.0, %v2087_v59 }
0x1e68   :  { %v2089_v37 = vmul.f32 %v2589_v14, %v2088_v6 }
0x1e6a   :  { %v2090_v9 = vadd.f32 %v2589_v14, %v2089_v37 }
0x1e6c   :  { %v2094_v0 = vsel %vm2093_vm14, %v2589_v14, %v2090_v9 }
0x1e6d   :  { %v2099_v42 = vsel %vm2096_vm15, %v2098_v38, %v2094_v0 }
0x1e6e   :  { %v2104_v36 = vmul.f32 %v2099_v42, %v3320_v29 }
0x1e8a   :  { %v2108_v40 = vpop.permute.xlu2 %2107 }
0x1e8b   :  { %v2113_v23 = vmul.f32 %v2108_v40, %v2084_v57 }
0x1e8d   :  { %2117 = vrot.lane.b32.xlu1 %v2113_v23, %s2598_s23 }
0x1ec2   :  { %v2110_v5 = vpop.permute.xlu0 %2109 }
0x1ec3   :  { %v2114_v44 = vmul.f32 %v2110_v5, %v2099_v42 }
0x1ec5   :  { %2119 = vrot.lane.b32.xlu2 %v2114_v44, %s2598_s23 }
0x1eff   :  { %v2118_v11 = vpop.permute.xlu1 %2117 }
0x1f00   :  { %v2123_v21 = vadd.f32 %v2118_v11, %v2103_v3 }
0x1f02   :  { %2590 = vtanh.f32 %v2123_v21 }
0x1f08   :  { %v2591_v19 = vpop.eup %2590 }
0x1f09   :  { %2129 = vrot.lane.b32.xlu0 %v2591_v19, %s2598_s23 }
0x1f1f   :  { %v2120_v46 = vpop.permute.xlu2 %2119 }
0x1f20   :  { %v2124_v49 = vadd.f32 %v2120_v46, %v2104_v36 }
0x1f22   :  { %2592 = vtanh.f32 %v2124_v49 }
0x1f28   :  { %v2593_v53 = vpop.eup %2592 }
0x1f29   :  { %2131 = vrot.lane.b32.xlu1 %v2593_v53, %s2598_s23 }
0x1f7b   :  { %v2130_v58 = vpop.permute.xlu0 %2129 }
0x1f7c   :  { %v2135_v31 = vmul.f32 %v2130_v58, %v2084_v57 }
0x1f7e   :  { %v2137_v52 = vmax.f32 %v3331_v15, %v2135_v31 }
0x1f9b   :  { %v2132_v48 = vpop.permute.xlu1 %2131 }
0x1f9c   :  { %v2136_v29 = vmul.f32 %v2132_v48, %v2099_v42 }
0x1f9e   :  { %v2138_v61 = vmax.f32 %v3339_v41, %v2136_v29 }
0x1fa0   :  { %v2139_v2 = vpack.c.bf16 %v2138_v61, %v2137_v52 }
0x1fa2   :  { %2149 = vrot.lane.b32.xlu2 %v2139_v2, %s2599_s28 }
0x1ffc   :  { %v2150_v17 = vpop.permute.xlu2 %2149 }
0x1ffd   :  { %2314 = vmatmul.msk.bf16.vlgmr.msrb.gmra.mxu1 %vm147_vm9, %v2150_v17 }
0x207a   :  { %v2175_v56 = vpop.f32.mrf.mxu1 }
0x207b   :  { %v2176_v26 = vadd.f32 %v2337_v55, %v2175_v56 }
0x207d   :  { %2180 = vst [vmem:[%s3382_s9] sm:$0xff] %v2176_v26 }
0x2082   :  { %v2177_v27 = vpop.f32.mrf.mxu1 }
0x2083   :  { %v2178_v15 = vadd.f32 %v2337_v55, %v2177_v27 }
0x2085   :  { %2181 = vst [vmem:[%s3382_s9 + $0x8] sm:$0xff] %v2178_v15 }

</bundles_post_ra>
